<compile_context>
chip_gen: v5e
topology: v5e:2x2
jax: 0.10.0
libtpu: 0.0.40
codegen_flags: <defaults>
</compile_context>

<pallas_src>
import numpy as np

import jax
import jax.numpy as jnp
from jax.experimental import pallas as pl
from jax.experimental.pallas import tpu as pltpu


# ----------------------------------------------------------------------------
# Fused Pallas kernel: whole forward pass for one batch row.
# ----------------------------------------------------------------------------
def _fused_resnet_kernel(x_ref,
                         m0_ref, b0_ref,
                         p0_ref, p1_ref, p2_ref,
                         l1c1m, l1c1b, l1c2m, l1c2b, l1scm, l1scb,
                         l2c1m, l2c1b, l2c2m, l2c2b, l2scm, l2scb,
                         l3c1m, l3c1b, l3c2m, l3c2b, l3scm, l3scb,
                         avg_ref, fcw_ref, fcb_ref,
                         out_ref, feat_ref):
    f32 = jnp.float32

    def affine(h, m_ref, b_ref):          # folded conv+bn:  h @ M + b
        return jnp.dot(h, m_ref[...], preferred_element_type=f32) + b_ref[...]

    def relu(h):
        return jnp.maximum(h, 0.0)

    # stem: conv1 + bn1 + relu
    h = relu(affine(x_ref[...].astype(f32), m0_ref, b0_ref))

    # MaxPool1d(k=3, s=2, p=1): three gathered views, elementwise max.
    h = jnp.maximum(
        jnp.maximum(jnp.dot(h, p0_ref[...], preferred_element_type=f32),
                    jnp.dot(h, p1_ref[...], preferred_element_type=f32)),
        jnp.dot(h, p2_ref[...], preferred_element_type=f32))

    def res_block(h, c1m, c1b, c2m, c2b, scm, scb):
        t = relu(affine(h, c1m, c1b))      # conv1 + bn1 + relu
        t = affine(t, c2m, c2b)            # conv2 + bn2
        s = affine(h, scm, scb)            # shortcut (conv+bn, or identity op)
        return relu(t + s)

    h = res_block(h, l1c1m, l1c1b, l1c2m, l1c2b, l1scm, l1scb)
    h = res_block(h, l2c1m, l2c1b, l2c2m, l2c2b, l2scm, l2scb)
    h = res_block(h, l3c1m, l3c1b, l3c2m, l3c2b, l3scm, l3scb)

    # head: adaptive-avg-pool(1)  +  Linear
    feat = jnp.dot(h, avg_ref[...], preferred_element_type=f32)
    feat_ref[...] = feat.astype(feat_ref.dtype)
    logits = jnp.dot(feat, fcw_ref[...], preferred_element_type=f32) + fcb_ref[...]
    out_ref[...] = logits.astype(out_ref.dtype)


# ----------------------------------------------------------------------------
# Trace-time operator folding (plain JAX / numpy glue, runs once per model).
# ----------------------------------------------------------------------------
def _window_indicator(lin, k, stride, pad):
    """u[l, t, j] = 1  iff input position l feeds tap t of output position j."""
    lout = (lin + 2 * pad - k) // stride + 1
    u = np.zeros((lin, k, lout), np.float32)
    for j in range(lout):
        for t in range(k):
            l = j * stride + t - pad
            if 0 <= l < lin:
                u[l, t, j] = 1.0
    return u, lout


def _conv_bn_op(w, bn_scale, bn_bias, *, lin, stride, pad):
    """Fold Conv1d(bias=False) + eval-BN into (M, b):  y_flat = x_flat @ M + b."""
    cout, cin, k = w.shape
    u, lout = _window_indicator(lin, k, stride, pad)
    m = jnp.einsum("ltj,oct->cloj", jnp.asarray(u), w,
                   precision=jax.lax.Precision.HIGHEST)
    m = m * bn_scale[None, None, :, None]                 # fold BN scale into W
    m = m.reshape(cin * lin, cout * lout)
    b = jnp.repeat(bn_bias, lout).reshape(1, cout * lout)
    return m, b, lout


def _identity_op(c, lin):
    return (jnp.asarray(np.eye(c * lin, dtype=np.float32)),
            jnp.zeros((1, c * lin), jnp.float32), lin)


def _maxpool_ops(c, lin, k=3, stride=2, pad=1):
    u, lout = _window_indicator(lin, k, stride, pad)
    eye_c = np.eye(c, dtype=np.float32)
    mats = [jnp.asarray(np.kron(eye_c, u[:, t, :])) for t in range(k)]
    return mats, lout


def _avgpool_op(c, lin):
    a = np.kron(np.eye(c, dtype=np.float32),
                np.ones((lin, 1), np.float32) / float(lin))
    return jnp.asarray(a)


def build_operators(p, in_channels, seq_len):
    """Pre-fold every conv/bn/pool/fc into dense matmul operators."""
    del in_channels
    ops = []
    l = seq_len
    m0, b0, l = _conv_bn_op(p["conv1_w"], *p["bn1"], lin=l, stride=1, pad=2)
    ops += [m0, b0]
    c = p["conv1_w"].shape[0]
    pool_mats, l = _maxpool_ops(c, l, k=3, stride=2, pad=1)
    ops += pool_mats

    def block_ops(bp, cin, lin, stride):
        cout = bp["conv1_w"].shape[0]
        c1m, c1b, lmid = _conv_bn_op(bp["conv1_w"], *bp["bn1"],
                                     lin=lin, stride=stride, pad=1)
        c2m, c2b, _ = _conv_bn_op(bp["conv2_w"], *bp["bn2"],
                                  lin=lmid, stride=1, pad=1)
        if "sc_w" in bp:
            scm, scb, _ = _conv_bn_op(bp["sc_w"], *bp["sc_bn"],
                                      lin=lin, stride=stride, pad=0)
        else:
            scm, scb, _ = _identity_op(cin, lin)
        return [c1m, c1b, c2m, c2b, scm, scb], cout, lmid

    for name in ("layer1", "layer2", "layer3"):
        blk, c, l = block_ops(p[name], c, l, stride=2)
        ops += blk

    ops.append(_avgpool_op(c, l))                # adaptive avg pool operator
    ops.append(p["fc_w"].T)                      # (C, num_classes)
    ops.append(p["fc_b"].reshape(1, -1))         # (1, num_classes)
    return ops, c


# ----------------------------------------------------------------------------
# Forward wrapper: single pallas_call for the whole network.
# ----------------------------------------------------------------------------
def base_resnet_forward(x, ops, num_features):
    n, cin, l = x.shape
    num_classes = ops[-1].shape[-1]
    x_flat = x.reshape(n, 1, cin * l)            # lane-dense: features on lanes

    def full_spec(a):                            # grid-invariant, VMEM-resident
        return pl.BlockSpec(a.shape, lambda i, nd=a.ndim: (0,) * nd)

    in_specs = [pl.BlockSpec((None, 1, cin * l), lambda i: (i, 0, 0))]
    in_specs += [full_spec(a) for a in ops]
    out_specs = (pl.BlockSpec((None, 1, num_classes), lambda i: (i, 0, 0)),
                 pl.BlockSpec((None, 1, num_features), lambda i: (i, 0, 0)))

    out, feat = pl.pallas_call(
        _fused_resnet_kernel,
        grid=(n,),
        in_specs=in_specs,
        out_specs=out_specs,
        out_shape=(jax.ShapeDtypeStruct((n, 1, num_classes), x.dtype),
                   jax.ShapeDtypeStruct((n, 1, num_features), x.dtype)),
        compiler_params=pltpu.CompilerParams(dimension_semantics=("parallel",)),
    )(x_flat, *ops)
    return out.reshape(n, num_classes), feat.reshape(n, num_features)


# ----------------------------------------------------------------------------
# Parameters (matching the PyTorch module structure, eval-mode BN).
# ----------------------------------------------------------------------------
def _bn_fold(c, eps=1e-5):
    gamma = jnp.ones((c,), jnp.float32)
    beta = jnp.zeros((c,), jnp.float32)
    running_mean = jnp.zeros((c,), jnp.float32)
    running_var = jnp.ones((c,), jnp.float32)
    scale = gamma / jnp.sqrt(running_var + eps)
    bias = beta - running_mean * scale
    return scale, bias


def init_params(key, in_channels, output_channel, num_classes):
    oc2 = output_channel // 2
    keys = iter(jax.random.split(key, 16))

    def conv_w(k, cout, cin, ksz):
        fan_in = cin * ksz
        return jax.random.normal(k, (cout, cin, ksz), jnp.float32) / jnp.sqrt(fan_in)

    def block(cin, cout, stride):
        bp = {
            "conv1_w": conv_w(next(keys), cout, cin, 3),
            "bn1": _bn_fold(cout),
            "conv2_w": conv_w(next(keys), cout, cout, 3),
            "bn2": _bn_fold(cout),
        }
        if stride != 1 or cin != cout:
            bp["sc_w"] = conv_w(next(keys), cout, cin, 1)
            bp["sc_bn"] = _bn_fold(cout)
        return bp

    return {
        "conv1_w": conv_w(next(keys), oc2, in_channels, 5),
        "bn1": _bn_fold(oc2),
        "layer1": block(oc2, oc2, 2),
        "layer2": block(oc2, output_channel, 2),
        "layer3": block(output_channel, output_channel, 2),
        "fc_w": jax.random.normal(next(keys), (num_classes, output_channel),
                                  jnp.float32) / jnp.sqrt(output_channel),
        "fc_b": jnp.zeros((num_classes,), jnp.float32),
    }


# ----------------------------------------------------------------------------
# Pure-JAX reference (for correctness check only).
# ----------------------------------------------------------------------------
def _conv1d_ref(x, w, stride, pad):
    return jax.lax.conv_general_dilated(
        x, w, window_strides=(stride,), padding=[(pad, pad)],
        dimension_numbers=("NCH", "OIH", "NCH"),
        precision=jax.lax.Precision.HIGHEST)


def _bn_ref(x, scale, bias):
    return x * scale[None, :, None] + bias[None, :, None]


def _maxpool_ref(x, k=3, stride=2, pad=1):
    return jax.lax.reduce_window(
        x, -jnp.inf, jax.lax.max,
        window_dimensions=(1, 1, k), window_strides=(1, 1, stride),
        padding=[(0, 0), (0, 0), (pad, pad)])


def reference_forward(x, p):
    h = jnp.maximum(_bn_ref(_conv1d_ref(x, p["conv1_w"], 1, 2), *p["bn1"]), 0.0)
    h = _maxpool_ref(h)

    def block(h, bp, stride):
        t = jnp.maximum(_bn_ref(_conv1d_ref(h, bp["conv1_w"], stride, 1), *bp["bn1"]), 0.0)
        t = _bn_ref(_conv1d_ref(t, bp["conv2_w"], 1, 1), *bp["bn2"])
        if "sc_w" in bp:
            s = _bn_ref(_conv1d_ref(h, bp["sc_w"], stride, 0), *bp["sc_bn"])
        else:
            s = h
        return jnp.maximum(t + s, 0.0)

    h = block(h, p["layer1"], 2)
    h = block(h, p["layer2"], 2)
    h = block(h, p["layer3"], 2)
    feat = jnp.mean(h, axis=-1)
    out = jnp.dot(feat, p["fc_w"].T, precision=jax.lax.Precision.HIGHEST) + p["fc_b"]
    return out, feat


# ----------------------------------------------------------------------------
if __name__ == "__main__":
    in_channels, output_channel, num_classes = 4, 32, 10
    N, L = 2, 16

    key = jax.random.PRNGKey(0)
    k_x, k_p = jax.random.split(key)
    x = jax.random.normal(k_x, (N, in_channels, L), jnp.float32)
    params = init_params(k_p, in_channels, output_channel, num_classes)

    ops, num_features = build_operators(params, in_channels, L)
    out, feats = base_resnet_forward(x, ops, num_features)
    jax.block_until_ready((out, feats))

    assert out.shape == (N, num_classes), out.shape
    assert feats.shape == (N, output_channel), feats.shape
    assert bool(jnp.all(jnp.isfinite(out))) and bool(jnp.all(jnp.isfinite(feats)))

    ref_out, ref_feats = reference_forward(x, params)
    assert bool(jnp.allclose(out, ref_out, atol=2e-3, rtol=2e-3)), \
        float(jnp.max(jnp.abs(out - ref_out)))
    assert bool(jnp.allclose(feats, ref_feats, atol=2e-3, rtol=2e-3)), \
        float(jnp.max(jnp.abs(feats - ref_feats)))

    print("KERNEL_OK")
</pallas_src>

<mosaic_0001>
module attributes {stable_mosaic.version = 11 : i64} {
  func.func @_fused_resnet_kernel(%arg0: i32, %arg1: memref<1x1x64xf32, #tpu.memory_space<vmem>>, %arg2: memref<64x256xf32, #tpu.memory_space<vmem>>, %arg3: memref<1x256xf32, #tpu.memory_space<vmem>>, %arg4: memref<256x128xf32, #tpu.memory_space<vmem>>, %arg5: memref<256x128xf32, #tpu.memory_space<vmem>>, %arg6: memref<256x128xf32, #tpu.memory_space<vmem>>, %arg7: memref<128x64xf32, #tpu.memory_space<vmem>>, %arg8: memref<1x64xf32, #tpu.memory_space<vmem>>, %arg9: memref<64x64xf32, #tpu.memory_space<vmem>>, %arg10: memref<1x64xf32, #tpu.memory_space<vmem>>, %arg11: memref<128x64xf32, #tpu.memory_space<vmem>>, %arg12: memref<1x64xf32, #tpu.memory_space<vmem>>, %arg13: memref<64x64xf32, #tpu.memory_space<vmem>>, %arg14: memref<1x64xf32, #tpu.memory_space<vmem>>, %arg15: memref<64x64xf32, #tpu.memory_space<vmem>>, %arg16: memref<1x64xf32, #tpu.memory_space<vmem>>, %arg17: memref<64x64xf32, #tpu.memory_space<vmem>>, %arg18: memref<1x64xf32, #tpu.memory_space<vmem>>, %arg19: memref<64x32xf32, #tpu.memory_space<vmem>>, %arg20: memref<1x32xf32, #tpu.memory_space<vmem>>, %arg21: memref<32x32xf32, #tpu.memory_space<vmem>>, %arg22: memref<1x32xf32, #tpu.memory_space<vmem>>, %arg23: memref<64x32xf32, #tpu.memory_space<vmem>>, %arg24: memref<1x32xf32, #tpu.memory_space<vmem>>, %arg25: memref<32x32xf32, #tpu.memory_space<vmem>>, %arg26: memref<32x10xf32, #tpu.memory_space<vmem>>, %arg27: memref<1x10xf32, #tpu.memory_space<vmem>>, %arg28: memref<1x1x10xf32, #tpu.memory_space<vmem>>, %arg29: memref<1x1x32xf32, #tpu.memory_space<vmem>>) attributes {dimension_semantics = [#tpu.dimension_semantics<parallel>], iteration_bounds = array<i64: 2>, scalar_prefetch = 0 : i64, scratch_operands = 0 : i64, tpu.core_type = #tpu.core_type<tc>, window_params = [{transform_indices = @transform_0, window_bounds = array<i64: 1, 1, 64>}, {pipeline_mode = #tpu.pipeline_mode<synchronous>, transform_indices = @transform_1, window_bounds = array<i64: 64, 256>}, {pipeline_mode = #tpu.pipeline_mode<synchronous>, transform_indices = @transform_2, window_bounds = array<i64: 1, 256>}, {pipeline_mode = #tpu.pipeline_mode<synchronous>, transform_indices = @transform_3, window_bounds = array<i64: 256, 128>}, {pipeline_mode = #tpu.pipeline_mode<synchronous>, transform_indices = @transform_4, window_bounds = array<i64: 256, 128>}, {pipeline_mode = #tpu.pipeline_mode<synchronous>, transform_indices = @transform_5, window_bounds = array<i64: 256, 128>}, {pipeline_mode = #tpu.pipeline_mode<synchronous>, transform_indices = @transform_6, window_bounds = array<i64: 128, 64>}, {pipeline_mode = #tpu.pipeline_mode<synchronous>, transform_indices = @transform_7, window_bounds = array<i64: 1, 64>}, {pipeline_mode = #tpu.pipeline_mode<synchronous>, transform_indices = @transform_8, window_bounds = array<i64: 64, 64>}, {pipeline_mode = #tpu.pipeline_mode<synchronous>, transform_indices = @transform_9, window_bounds = array<i64: 1, 64>}, {pipeline_mode = #tpu.pipeline_mode<synchronous>, transform_indices = @transform_10, window_bounds = array<i64: 128, 64>}, {pipeline_mode = #tpu.pipeline_mode<synchronous>, transform_indices = @transform_11, window_bounds = array<i64: 1, 64>}, {pipeline_mode = #tpu.pipeline_mode<synchronous>, transform_indices = @transform_12, window_bounds = array<i64: 64, 64>}, {pipeline_mode = #tpu.pipeline_mode<synchronous>, transform_indices = @transform_13, window_bounds = array<i64: 1, 64>}, {pipeline_mode = #tpu.pipeline_mode<synchronous>, transform_indices = @transform_14, window_bounds = array<i64: 64, 64>}, {pipeline_mode = #tpu.pipeline_mode<synchronous>, transform_indices = @transform_15, window_bounds = array<i64: 1, 64>}, {pipeline_mode = #tpu.pipeline_mode<synchronous>, transform_indices = @transform_16, window_bounds = array<i64: 64, 64>}, {pipeline_mode = #tpu.pipeline_mode<synchronous>, transform_indices = @transform_17, window_bounds = array<i64: 1, 64>}, {pipeline_mode = #tpu.pipeline_mode<synchronous>, transform_indices = @transform_18, window_bounds = array<i64: 64, 32>}, {pipeline_mode = #tpu.pipeline_mode<synchronous>, transform_indices = @transform_19, window_bounds = array<i64: 1, 32>}, {pipeline_mode = #tpu.pipeline_mode<synchronous>, transform_indices = @transform_20, window_bounds = array<i64: 32, 32>}, {pipeline_mode = #tpu.pipeline_mode<synchronous>, transform_indices = @transform_21, window_bounds = array<i64: 1, 32>}, {pipeline_mode = #tpu.pipeline_mode<synchronous>, transform_indices = @transform_22, window_bounds = array<i64: 64, 32>}, {pipeline_mode = #tpu.pipeline_mode<synchronous>, transform_indices = @transform_23, window_bounds = array<i64: 1, 32>}, {pipeline_mode = #tpu.pipeline_mode<synchronous>, transform_indices = @transform_24, window_bounds = array<i64: 32, 32>}, {pipeline_mode = #tpu.pipeline_mode<synchronous>, transform_indices = @transform_25, window_bounds = array<i64: 32, 10>}, {pipeline_mode = #tpu.pipeline_mode<synchronous>, transform_indices = @transform_26, window_bounds = array<i64: 1, 10>}, {transform_indices = @transform_27, window_bounds = array<i64: 1, 1, 10>}, {transform_indices = @transform_28, window_bounds = array<i64: 1, 1, 32>}]} {
    %c0 = arith.constant 0 : index
    %c0_0 = arith.constant 0 : index
    %c0_1 = arith.constant 0 : index
    %0 = vector.load %arg1[%c0, %c0_0, %c0_1] : memref<1x1x64xf32, #tpu.memory_space<vmem>>, vector<1x1x64xf32>
    %1 = vector.shape_cast %0 : vector<1x1x64xf32> to vector<1x64xf32>
    %c0_2 = arith.constant 0 : index
    %c0_3 = arith.constant 0 : index
    %2 = vector.load %arg2[%c0_2, %c0_3] : memref<64x256xf32, #tpu.memory_space<vmem>>, vector<64x256xf32>
    %cst = arith.constant dense<0.000000e+00> : vector<1x256xf32>
    %3 = tpu.matmul %1, %2, %cst {dimension_numbers = #tpu.dot_dimension_numbers<[1], [0], [0], [1], [0, 0, 1, 1], [], []>} : vector<1x64xf32>, vector<64x256xf32>, vector<1x256xf32> -> vector<1x256xf32>
    %c0_4 = arith.constant 0 : index
    %c0_5 = arith.constant 0 : index
    %4 = vector.load %arg3[%c0_4, %c0_5] : memref<1x256xf32, #tpu.memory_space<vmem>>, vector<1x256xf32>
    %5 = arith.addf %3, %4 : vector<1x256xf32>
    %cst_6 = arith.constant 0.000000e+00 : f32
    %6 = vector.broadcast %cst_6 : f32 to vector<1x256xf32>
    %7 = arith.maximumf %5, %6 : vector<1x256xf32>
    %c0_7 = arith.constant 0 : index
    %c0_8 = arith.constant 0 : index
    %8 = vector.load %arg4[%c0_7, %c0_8] : memref<256x128xf32, #tpu.memory_space<vmem>>, vector<256x128xf32>
    %cst_9 = arith.constant dense<0.000000e+00> : vector<1x128xf32>
    %9 = tpu.matmul %7, %8, %cst_9 {dimension_numbers = #tpu.dot_dimension_numbers<[1], [0], [0], [1], [0, 0, 1, 1], [], []>} : vector<1x256xf32>, vector<256x128xf32>, vector<1x128xf32> -> vector<1x128xf32>
    %c0_10 = arith.constant 0 : index
    %c0_11 = arith.constant 0 : index
    %10 = vector.load %arg5[%c0_10, %c0_11] : memref<256x128xf32, #tpu.memory_space<vmem>>, vector<256x128xf32>
    %cst_12 = arith.constant dense<0.000000e+00> : vector<1x128xf32>
    %11 = tpu.matmul %7, %10, %cst_12 {dimension_numbers = #tpu.dot_dimension_numbers<[1], [0], [0], [1], [0, 0, 1, 1], [], []>} : vector<1x256xf32>, vector<256x128xf32>, vector<1x128xf32> -> vector<1x128xf32>
    %12 = arith.maximumf %9, %11 : vector<1x128xf32>
    %c0_13 = arith.constant 0 : index
    %c0_14 = arith.constant 0 : index
    %13 = vector.load %arg6[%c0_13, %c0_14] : memref<256x128xf32, #tpu.memory_space<vmem>>, vector<256x128xf32>
    %cst_15 = arith.constant dense<0.000000e+00> : vector<1x128xf32>
    %14 = tpu.matmul %7, %13, %cst_15 {dimension_numbers = #tpu.dot_dimension_numbers<[1], [0], [0], [1], [0, 0, 1, 1], [], []>} : vector<1x256xf32>, vector<256x128xf32>, vector<1x128xf32> -> vector<1x128xf32>
    %15 = arith.maximumf %12, %14 : vector<1x128xf32>
    %c0_16 = arith.constant 0 : index
    %c0_17 = arith.constant 0 : index
    %16 = vector.load %arg7[%c0_16, %c0_17] : memref<128x64xf32, #tpu.memory_space<vmem>>, vector<128x64xf32>
    %cst_18 = arith.constant dense<0.000000e+00> : vector<1x64xf32>
    %17 = tpu.matmul %15, %16, %cst_18 {dimension_numbers = #tpu.dot_dimension_numbers<[1], [0], [0], [1], [0, 0, 1, 1], [], []>} : vector<1x128xf32>, vector<128x64xf32>, vector<1x64xf32> -> vector<1x64xf32>
    %c0_19 = arith.constant 0 : index
    %c0_20 = arith.constant 0 : index
    %18 = vector.load %arg8[%c0_19, %c0_20] : memref<1x64xf32, #tpu.memory_space<vmem>>, vector<1x64xf32>
    %19 = arith.addf %17, %18 : vector<1x64xf32>
    %cst_21 = arith.constant 0.000000e+00 : f32
    %20 = vector.broadcast %cst_21 : f32 to vector<1x64xf32>
    %21 = arith.maximumf %19, %20 : vector<1x64xf32>
    %c0_22 = arith.constant 0 : index
    %c0_23 = arith.constant 0 : index
    %22 = vector.load %arg9[%c0_22, %c0_23] : memref<64x64xf32, #tpu.memory_space<vmem>>, vector<64x64xf32>
    %cst_24 = arith.constant dense<0.000000e+00> : vector<1x64xf32>
    %23 = tpu.matmul %21, %22, %cst_24 {dimension_numbers = #tpu.dot_dimension_numbers<[1], [0], [0], [1], [0, 0, 1, 1], [], []>} : vector<1x64xf32>, vector<64x64xf32>, vector<1x64xf32> -> vector<1x64xf32>
    %c0_25 = arith.constant 0 : index
    %c0_26 = arith.constant 0 : index
    %24 = vector.load %arg10[%c0_25, %c0_26] : memref<1x64xf32, #tpu.memory_space<vmem>>, vector<1x64xf32>
    %25 = arith.addf %23, %24 : vector<1x64xf32>
    %c0_27 = arith.constant 0 : index
    %c0_28 = arith.constant 0 : index
    %26 = vector.load %arg11[%c0_27, %c0_28] : memref<128x64xf32, #tpu.memory_space<vmem>>, vector<128x64xf32>
    %cst_29 = arith.constant dense<0.000000e+00> : vector<1x64xf32>
    %27 = tpu.matmul %15, %26, %cst_29 {dimension_numbers = #tpu.dot_dimension_numbers<[1], [0], [0], [1], [0, 0, 1, 1], [], []>} : vector<1x128xf32>, vector<128x64xf32>, vector<1x64xf32> -> vector<1x64xf32>
    %c0_30 = arith.constant 0 : index
    %c0_31 = arith.constant 0 : index
    %28 = vector.load %arg12[%c0_30, %c0_31] : memref<1x64xf32, #tpu.memory_space<vmem>>, vector<1x64xf32>
    %29 = arith.addf %27, %28 : vector<1x64xf32>
    %30 = arith.addf %25, %29 : vector<1x64xf32>
    %cst_32 = arith.constant 0.000000e+00 : f32
    %31 = vector.broadcast %cst_32 : f32 to vector<1x64xf32>
    %32 = arith.maximumf %30, %31 : vector<1x64xf32>
    %c0_33 = arith.constant 0 : index
    %c0_34 = arith.constant 0 : index
    %33 = vector.load %arg13[%c0_33, %c0_34] : memref<64x64xf32, #tpu.memory_space<vmem>>, vector<64x64xf32>
    %cst_35 = arith.constant dense<0.000000e+00> : vector<1x64xf32>
    %34 = tpu.matmul %32, %33, %cst_35 {dimension_numbers = #tpu.dot_dimension_numbers<[1], [0], [0], [1], [0, 0, 1, 1], [], []>} : vector<1x64xf32>, vector<64x64xf32>, vector<1x64xf32> -> vector<1x64xf32>
    %c0_36 = arith.constant 0 : index
    %c0_37 = arith.constant 0 : index
    %35 = vector.load %arg14[%c0_36, %c0_37] : memref<1x64xf32, #tpu.memory_space<vmem>>, vector<1x64xf32>
    %36 = arith.addf %34, %35 : vector<1x64xf32>
    %cst_38 = arith.constant 0.000000e+00 : f32
    %37 = vector.broadcast %cst_38 : f32 to vector<1x64xf32>
    %38 = arith.maximumf %36, %37 : vector<1x64xf32>
    %c0_39 = arith.constant 0 : index
    %c0_40 = arith.constant 0 : index
    %39 = vector.load %arg15[%c0_39, %c0_40] : memref<64x64xf32, #tpu.memory_space<vmem>>, vector<64x64xf32>
    %cst_41 = arith.constant dense<0.000000e+00> : vector<1x64xf32>
    %40 = tpu.matmul %38, %39, %cst_41 {dimension_numbers = #tpu.dot_dimension_numbers<[1], [0], [0], [1], [0, 0, 1, 1], [], []>} : vector<1x64xf32>, vector<64x64xf32>, vector<1x64xf32> -> vector<1x64xf32>
    %c0_42 = arith.constant 0 : index
    %c0_43 = arith.constant 0 : index
    %41 = vector.load %arg16[%c0_42, %c0_43] : memref<1x64xf32, #tpu.memory_space<vmem>>, vector<1x64xf32>
    %42 = arith.addf %40, %41 : vector<1x64xf32>
    %c0_44 = arith.constant 0 : index
    %c0_45 = arith.constant 0 : index
    %43 = vector.load %arg17[%c0_44, %c0_45] : memref<64x64xf32, #tpu.memory_space<vmem>>, vector<64x64xf32>
    %cst_46 = arith.constant dense<0.000000e+00> : vector<1x64xf32>
    %44 = tpu.matmul %32, %43, %cst_46 {dimension_numbers = #tpu.dot_dimension_numbers<[1], [0], [0], [1], [0, 0, 1, 1], [], []>} : vector<1x64xf32>, vector<64x64xf32>, vector<1x64xf32> -> vector<1x64xf32>
    %c0_47 = arith.constant 0 : index
    %c0_48 = arith.constant 0 : index
    %45 = vector.load %arg18[%c0_47, %c0_48] : memref<1x64xf32, #tpu.memory_space<vmem>>, vector<1x64xf32>
    %46 = arith.addf %44, %45 : vector<1x64xf32>
    %47 = arith.addf %42, %46 : vector<1x64xf32>
    %cst_49 = arith.constant 0.000000e+00 : f32
    %48 = vector.broadcast %cst_49 : f32 to vector<1x64xf32>
    %49 = arith.maximumf %47, %48 : vector<1x64xf32>
    %c0_50 = arith.constant 0 : index
    %c0_51 = arith.constant 0 : index
    %50 = vector.load %arg19[%c0_50, %c0_51] : memref<64x32xf32, #tpu.memory_space<vmem>>, vector<64x32xf32>
    %cst_52 = arith.constant dense<0.000000e+00> : vector<1x32xf32>
    %51 = tpu.matmul %49, %50, %cst_52 {dimension_numbers = #tpu.dot_dimension_numbers<[1], [0], [0], [1], [0, 0, 1, 1], [], []>} : vector<1x64xf32>, vector<64x32xf32>, vector<1x32xf32> -> vector<1x32xf32>
    %c0_53 = arith.constant 0 : index
    %c0_54 = arith.constant 0 : index
    %52 = vector.load %arg20[%c0_53, %c0_54] : memref<1x32xf32, #tpu.memory_space<vmem>>, vector<1x32xf32>
    %53 = arith.addf %51, %52 : vector<1x32xf32>
    %cst_55 = arith.constant 0.000000e+00 : f32
    %54 = vector.broadcast %cst_55 : f32 to vector<1x32xf32>
    %55 = arith.maximumf %53, %54 : vector<1x32xf32>
    %c0_56 = arith.constant 0 : index
    %c0_57 = arith.constant 0 : index
    %56 = vector.load %arg21[%c0_56, %c0_57] : memref<32x32xf32, #tpu.memory_space<vmem>>, vector<32x32xf32>
    %cst_58 = arith.constant dense<0.000000e+00> : vector<1x32xf32>
    %57 = tpu.matmul %55, %56, %cst_58 {dimension_numbers = #tpu.dot_dimension_numbers<[1], [0], [0], [1], [0, 0, 1, 1], [], []>} : vector<1x32xf32>, vector<32x32xf32>, vector<1x32xf32> -> vector<1x32xf32>
    %c0_59 = arith.constant 0 : index
    %c0_60 = arith.constant 0 : index
    %58 = vector.load %arg22[%c0_59, %c0_60] : memref<1x32xf32, #tpu.memory_space<vmem>>, vector<1x32xf32>
    %59 = arith.addf %57, %58 : vector<1x32xf32>
    %c0_61 = arith.constant 0 : index
    %c0_62 = arith.constant 0 : index
    %60 = vector.load %arg23[%c0_61, %c0_62] : memref<64x32xf32, #tpu.memory_space<vmem>>, vector<64x32xf32>
    %cst_63 = arith.constant dense<0.000000e+00> : vector<1x32xf32>
    %61 = tpu.matmul %49, %60, %cst_63 {dimension_numbers = #tpu.dot_dimension_numbers<[1], [0], [0], [1], [0, 0, 1, 1], [], []>} : vector<1x64xf32>, vector<64x32xf32>, vector<1x32xf32> -> vector<1x32xf32>
    %c0_64 = arith.constant 0 : index
    %c0_65 = arith.constant 0 : index
    %62 = vector.load %arg24[%c0_64, %c0_65] : memref<1x32xf32, #tpu.memory_space<vmem>>, vector<1x32xf32>
    %63 = arith.addf %61, %62 : vector<1x32xf32>
    %64 = arith.addf %59, %63 : vector<1x32xf32>
    %cst_66 = arith.constant 0.000000e+00 : f32
    %65 = vector.broadcast %cst_66 : f32 to vector<1x32xf32>
    %66 = arith.maximumf %64, %65 : vector<1x32xf32>
    %c0_67 = arith.constant 0 : index
    %c0_68 = arith.constant 0 : index
    %67 = vector.load %arg25[%c0_67, %c0_68] : memref<32x32xf32, #tpu.memory_space<vmem>>, vector<32x32xf32>
    %cst_69 = arith.constant dense<0.000000e+00> : vector<1x32xf32>
    %68 = tpu.matmul %66, %67, %cst_69 {dimension_numbers = #tpu.dot_dimension_numbers<[1], [0], [0], [1], [0, 0, 1, 1], [], []>} : vector<1x32xf32>, vector<32x32xf32>, vector<1x32xf32> -> vector<1x32xf32>
    %c0_70 = arith.constant 0 : index
    %c0_71 = arith.constant 0 : index
    %c0_72 = arith.constant 0 : index
    %69 = vector.load %arg29[%c0_70, %c0_71, %c0_72] : memref<1x1x32xf32, #tpu.memory_space<vmem>>, vector<1x1x32xf32>
    %70 = vector.shape_cast %69 : vector<1x1x32xf32> to vector<1x32xf32>
    %71 = vector.shape_cast %68 : vector<1x32xf32> to vector<1x1x32xf32>
    tpu.vector_store %arg29[%c0_70, %c0_71, %c0_72], %71 {strides = array<i32>} : memref<1x1x32xf32, #tpu.memory_space<vmem>>, vector<1x1x32xf32>,
    %c0_73 = arith.constant 0 : index
    %c0_74 = arith.constant 0 : index
    %72 = vector.load %arg26[%c0_73, %c0_74] : memref<32x10xf32, #tpu.memory_space<vmem>>, vector<32x10xf32>
    %cst_75 = arith.constant dense<0.000000e+00> : vector<1x10xf32>
    %73 = tpu.matmul %68, %72, %cst_75 {dimension_numbers = #tpu.dot_dimension_numbers<[1], [0], [0], [1], [0, 0, 1, 1], [], []>} : vector<1x32xf32>, vector<32x10xf32>, vector<1x10xf32> -> vector<1x10xf32>
    %c0_76 = arith.constant 0 : index
    %c0_77 = arith.constant 0 : index
    %74 = vector.load %arg27[%c0_76, %c0_77] : memref<1x10xf32, #tpu.memory_space<vmem>>, vector<1x10xf32>
    %75 = arith.addf %73, %74 : vector<1x10xf32>
    %c0_78 = arith.constant 0 : index
    %c0_79 = arith.constant 0 : index
    %c0_80 = arith.constant 0 : index
    %76 = vector.load %arg28[%c0_78, %c0_79, %c0_80] : memref<1x1x10xf32, #tpu.memory_space<vmem>>, vector<1x1x10xf32>
    %77 = vector.shape_cast %76 : vector<1x1x10xf32> to vector<1x10xf32>
    %78 = vector.shape_cast %75 : vector<1x10xf32> to vector<1x1x10xf32>
    tpu.vector_store %arg28[%c0_78, %c0_79, %c0_80], %78 {strides = array<i32>} : memref<1x1x10xf32, #tpu.memory_space<vmem>>, vector<1x1x10xf32>,
    return
  }
  func.func @transform_0(%arg0: i32) -> (i32, i32, i32) {
    %c0_i32 = arith.constant 0 : i32
    %c0_i32_0 = arith.constant 0 : i32
    %c0_i32_1 = arith.constant 0 : i32
    return %arg0, %c0_i32, %c0_i32_0 : i32, i32, i32
  }
  func.func @transform_1(%arg0: i32) -> (i32, i32) {
    %c0_i32 = arith.constant 0 : i32
    %c0_i32_0 = arith.constant 0 : i32
    %c0_i32_1 = arith.constant 0 : i32
    return %c0_i32, %c0_i32_0 : i32, i32
  }
  func.func @transform_2(%arg0: i32) -> (i32, i32) {
    %c0_i32 = arith.constant 0 : i32
    %c0_i32_0 = arith.constant 0 : i32
    %c0_i32_1 = arith.constant 0 : i32
    return %c0_i32, %c0_i32_0 : i32, i32
  }
  func.func @transform_3(%arg0: i32) -> (i32, i32) {
    %c0_i32 = arith.constant 0 : i32
    %c0_i32_0 = arith.constant 0 : i32
    %c0_i32_1 = arith.constant 0 : i32
    return %c0_i32, %c0_i32_0 : i32, i32
  }
  func.func @transform_4(%arg0: i32) -> (i32, i32) {
    %c0_i32 = arith.constant 0 : i32
    %c0_i32_0 = arith.constant 0 : i32
    %c0_i32_1 = arith.constant 0 : i32
    return %c0_i32, %c0_i32_0 : i32, i32
  }
  func.func @transform_5(%arg0: i32) -> (i32, i32) {
    %c0_i32 = arith.constant 0 : i32
    %c0_i32_0 = arith.constant 0 : i32
    %c0_i32_1 = arith.constant 0 : i32
    return %c0_i32, %c0_i32_0 : i32, i32
  }
  func.func @transform_6(%arg0: i32) -> (i32, i32) {
    %c0_i32 = arith.constant 0 : i32
    %c0_i32_0 = arith.constant 0 : i32
    %c0_i32_1 = arith.constant 0 : i32
    return %c0_i32, %c0_i32_0 : i32, i32
  }
  func.func @transform_7(%arg0: i32) -> (i32, i32) {
    %c0_i32 = arith.constant 0 : i32
    %c0_i32_0 = arith.constant 0 : i32
    %c0_i32_1 = arith.constant 0 : i32
    return %c0_i32, %c0_i32_0 : i32, i32
  }
  func.func @transform_8(%arg0: i32) -> (i32, i32) {
    %c0_i32 = arith.constant 0 : i32
    %c0_i32_0 = arith.constant 0 : i32
    %c0_i32_1 = arith.constant 0 : i32
    return %c0_i32, %c0_i32_0 : i32, i32
  }
  func.func @transform_9(%arg0: i32) -> (i32, i32) {
    %c0_i32 = arith.constant 0 : i32
    %c0_i32_0 = arith.constant 0 : i32
    %c0_i32_1 = arith.constant 0 : i32
    return %c0_i32, %c0_i32_0 : i32, i32
  }
  func.func @transform_10(%arg0: i32) -> (i32, i32) {
    %c0_i32 = arith.constant 0 : i32
    %c0_i32_0 = arith.constant 0 : i32
    %c0_i32_1 = arith.constant 0 : i32
    return %c0_i32, %c0_i32_0 : i32, i32
  }
  func.func @transform_11(%arg0: i32) -> (i32, i32) {
    %c0_i32 = arith.constant 0 : i32
    %c0_i32_0 = arith.constant 0 : i32
    %c0_i32_1 = arith.constant 0 : i32
    return %c0_i32, %c0_i32_0 : i32, i32
  }
  func.func @transform_12(%arg0: i32) -> (i32, i32) {
    %c0_i32 = arith.constant 0 : i32
    %c0_i32_0 = arith.constant 0 : i32
    %c0_i32_1 = arith.constant 0 : i32
    return %c0_i32, %c0_i32_0 : i32, i32
  }
  func.func @transform_13(%arg0: i32) -> (i32, i32) {
    %c0_i32 = arith.constant 0 : i32
    %c0_i32_0 = arith.constant 0 : i32
    %c0_i32_1 = arith.constant 0 : i32
    return %c0_i32, %c0_i32_0 : i32, i32
  }
  func.func @transform_14(%arg0: i32) -> (i32, i32) {
    %c0_i32 = arith.constant 0 : i32
    %c0_i32_0 = arith.constant 0 : i32
    %c0_i32_1 = arith.constant 0 : i32
    return %c0_i32, %c0_i32_0 : i32, i32
  }
  func.func @transform_15(%arg0: i32) -> (i32, i32) {
    %c0_i32 = arith.constant 0 : i32
    %c0_i32_0 = arith.constant 0 : i32
    %c0_i32_1 = arith.constant 0 : i32
    return %c0_i32, %c0_i32_0 : i32, i32
  }
  func.func @transform_16(%arg0: i32) -> (i32, i32) {
    %c0_i32 = arith.constant 0 : i32
    %c0_i32_0 = arith.constant 0 : i32
    %c0_i32_1 = arith.constant 0 : i32
    return %c0_i32, %c0_i32_0 : i32, i32
  }
  func.func @transform_17(%arg0: i32) -> (i32, i32) {
    %c0_i32 = arith.constant 0 : i32
    %c0_i32_0 = arith.constant 0 : i32
    %c0_i32_1 = arith.constant 0 : i32
    return %c0_i32, %c0_i32_0 : i32, i32
  }
  func.func @transform_18(%arg0: i32) -> (i32, i32) {
    %c0_i32 = arith.constant 0 : i32
    %c0_i32_0 = arith.constant 0 : i32
    %c0_i32_1 = arith.constant 0 : i32
    return %c0_i32, %c0_i32_0 : i32, i32
  }
  func.func @transform_19(%arg0: i32) -> (i32, i32) {
    %c0_i32 = arith.constant 0 : i32
    %c0_i32_0 = arith.constant 0 : i32
    %c0_i32_1 = arith.constant 0 : i32
    return %c0_i32, %c0_i32_0 : i32, i32
  }
  func.func @transform_20(%arg0: i32) -> (i32, i32) {
    %c0_i32 = arith.constant 0 : i32
    %c0_i32_0 = arith.constant 0 : i32
    %c0_i32_1 = arith.constant 0 : i32
    return %c0_i32, %c0_i32_0 : i32, i32
  }
  func.func @transform_21(%arg0: i32) -> (i32, i32) {
    %c0_i32 = arith.constant 0 : i32
    %c0_i32_0 = arith.constant 0 : i32
    %c0_i32_1 = arith.constant 0 : i32
    return %c0_i32, %c0_i32_0 : i32, i32
  }
  func.func @transform_22(%arg0: i32) -> (i32, i32) {
    %c0_i32 = arith.constant 0 : i32
    %c0_i32_0 = arith.constant 0 : i32
    %c0_i32_1 = arith.constant 0 : i32
    return %c0_i32, %c0_i32_0 : i32, i32
  }
  func.func @transform_23(%arg0: i32) -> (i32, i32) {
    %c0_i32 = arith.constant 0 : i32
    %c0_i32_0 = arith.constant 0 : i32
    %c0_i32_1 = arith.constant 0 : i32
    return %c0_i32, %c0_i32_0 : i32, i32
  }
  func.func @transform_24(%arg0: i32) -> (i32, i32) {
    %c0_i32 = arith.constant 0 : i32
    %c0_i32_0 = arith.constant 0 : i32
    %c0_i32_1 = arith.constant 0 : i32
    return %c0_i32, %c0_i32_0 : i32, i32
  }
  func.func @transform_25(%arg0: i32) -> (i32, i32) {
    %c0_i32 = arith.constant 0 : i32
    %c0_i32_0 = arith.constant 0 : i32
    %c0_i32_1 = arith.constant 0 : i32
    return %c0_i32, %c0_i32_0 : i32, i32
  }
  func.func @transform_26(%arg0: i32) -> (i32, i32) {
    %c0_i32 = arith.constant 0 : i32
    %c0_i32_0 = arith.constant 0 : i32
    %c0_i32_1 = arith.constant 0 : i32
    return %c0_i32, %c0_i32_0 : i32, i32
  }
  func.func @transform_27(%arg0: i32) -> (i32, i32, i32) {
    %c0_i32 = arith.constant 0 : i32
    %c0_i32_0 = arith.constant 0 : i32
    %c0_i32_1 = arith.constant 0 : i32
    return %arg0, %c0_i32, %c0_i32_0 : i32, i32, i32
  }
  func.func @transform_28(%arg0: i32) -> (i32, i32, i32) {
    %c0_i32 = arith.constant 0 : i32
    %c0_i32_0 = arith.constant 0 : i32
    %c0_i32_1 = arith.constant 0 : i32
    return %arg0, %c0_i32, %c0_i32_0 : i32, i32, i32
  }
}

</mosaic_0001>

<bundles_post_ra>
// kernel: tpu_custom_call.1
= control target key start
LH: loop header
LB: loop body
LE: loop exit
PB: predicated region body
PF: predicated region fallthrough
CT: control target
= control target key end

     0   :  { %s2886_s0 = inlined_call_operand.vmem [shape: f32[2,1,64], index: 0, kind: input, shape index: {}]   ;;  %s2887_s1 = inlined_call_operand.hbm [shape: f32[64,256], index: 1, kind: input, shape index: {}]   ;;  %s2888_s2 = inlined_call_operand.vmem [shape: f32[1,256], index: 2, kind: input, shape index: {}]   ;;  %s2889_s3 = inlined_call_operand.vmem [shape: f32[256,128], index: 3, kind: input, shape index: {}]   ;;  %s2890_s4 = inlined_call_operand.hbm [shape: f32[256,128], index: 4, kind: input, shape index: {}]   ;;  %s2891_s5 = inlined_call_operand.hbm [shape: f32[256,128], index: 5, kind: input, shape index: {}]   ;;  %s2892_s6 = inlined_call_operand.vmem [shape: f32[128,64], index: 6, kind: input, shape index: {}]   ;;  %s2893_s7 = inlined_call_operand.vmem [shape: f32[1,64], index: 7, kind: input, shape index: {}]   ;;  %s2894_s8 = inlined_call_operand.vmem [shape: f32[64,64], index: 8, kind: input, shape index: {}]   ;;  %s2895_s9 = inlined_call_operand.vmem [shape: f32[1,64], index: 9, kind: input, shape index: {}]   ;;  %s2896_s10 = inlined_call_operand.vmem [shape: f32[128,64], index: 10, kind: input, shape index: {}]   ;;  %s2897_s11 = inlined_call_operand.vmem [shape: f32[1,64], index: 11, kind: input, shape index: {}]   ;;  %s2898_s12 = inlined_call_operand.vmem [shape: f32[64,64], index: 12, kind: input, shape index: {}]   ;;  %s2899_s13 = inlined_call_operand.vmem [shape: f32[1,64], index: 13, kind: input, shape index: {}]   ;;  %s2900_s14 = inlined_call_operand.hbm [shape: f32[64,64], index: 14, kind: input, shape index: {}]   ;;  %s2901_s15 = inlined_call_operand.vmem [shape: f32[1,64], index: 15, kind: input, shape index: {}]   ;;  %s2902_s16 = inlined_call_operand.hbm [shape: f32[64,64], index: 16, kind: input, shape index: {}]   ;;  %s2903_s17 = inlined_call_operand.vmem [shape: f32[1,64], index: 17, kind: input, shape index: {}]   ;;  %s2904_s18 = inlined_call_operand.vmem [shape: f32[64,32], index: 18, kind: input, shape index: {}]   ;;  %s2905_s19 = inlined_call_operand.vmem [shape: f32[1,32], index: 19, kind: input, shape index: {}]   ;;  %s2906_s20 = inlined_call_operand.vmem [shape: f32[32,32], index: 20, kind: input, shape index: {}]   ;;  %s2907_s21 = inlined_call_operand.vmem [shape: f32[1,32], index: 21, kind: input, shape index: {}]   ;;  %s2908_s22 = inlined_call_operand.vmem [shape: f32[64,32], index: 22, kind: input, shape index: {}]   ;;  %s2909_s23 = inlined_call_operand.vmem [shape: f32[1,32], index: 23, kind: input, shape index: {}]   ;;  %s2910_s24 = inlined_call_operand.hbm [shape: f32[32,32], index: 24, kind: input, shape index: {}]   ;;  %s2911_s25 = inlined_call_operand.vmem [shape: f32[32,10], index: 25, kind: input, shape index: {}]   ;;  %s2912_s26 = inlined_call_operand.vmem [shape: f32[1,10], index: 26, kind: input, shape index: {}]   ;;  %s2913_s27 = inlined_call_operand.hbm [shape: f32[2,1,10], index: 27, kind: output, shape index: {0}]   ;;  %s2914_s28 = inlined_call_operand.hbm [shape: f32[2,1,32], index: 28, kind: output, shape index: {1}]  }
   0x1   :  { %2934 = sst [smem:[#allocation29_spill]] %s2886_s0 }
   0x2   :  { %2935 = sst [smem:[#allocation30_spill]] %s2887_s1 }
   0x3   :  { %2936 = sst [smem:[#allocation31_spill]] %s2888_s2 }
   0x4   :  { %2937 = sst [smem:[#allocation32_spill]] %s2889_s3 }
   0x5   :  { %2938 = sst [smem:[#allocation33_spill]] %s2890_s4 }
   0x6   :  { %2939 = sst [smem:[#allocation34_spill]] %s2891_s5 }
   0x7   :  { %2940 = sst [smem:[#allocation35_spill]] %s2892_s6 }
   0x8   :  { %2941 = sst [smem:[#allocation36_spill]] %s2893_s7 }
   0x9   :  { %2942 = sst [smem:[#allocation37_spill]] %s2894_s8 }
   0xa   :  { %2943 = sst [smem:[#allocation38_spill]] %s2895_s9 }
   0xb   :  { %2944 = sst [smem:[#allocation39_spill]] %s2896_s10 }
   0xc   :  { %2945 = sst [smem:[#allocation40_spill]] %s2897_s11 }
   0xd   :  { %2946 = sst [smem:[#allocation41_spill]] %s2898_s12 }
   0xe   :  { %2947 = sst [smem:[#allocation42_spill]] %s2900_s14 }
   0xf   :  { %2948 = sst [smem:[#allocation43_spill]] %s2907_s21 }
  0x10   :  { %2949 = sst [smem:[#allocation44_spill]] %s2909_s23 }
  0x11   :  { %2950 = sst [smem:[#allocation45_spill]] %s2912_s26 }
  0x12   :  { %2951 = sst [smem:[#allocation46_spill]] %s2913_s27 }
  0x13   :  { %2952 = sst [smem:[#allocation47_spill]] %s2914_s28 }
  0x14   :  { %34 = vsyncpa [#allocation3], 0 }
  0x15   :  { %35 = vsyncpa [#allocation6], 0 }
  0x16   :  { %36 = vsyncpa [#allocation9], 0 }
  0x17   :  { %37 = vsyncpa [#allocation12], 0 }
  0x18   :  { %38 = vsyncpa [#allocation4], 0 }
  0x19   :  { %40 = vsyncpa [#allocation4 + $0x1], 0 }
  0x1a   :  { %41 = vsyncpa [#allocation15], 0 }
  0x1b   :  { %43 = vsyncpa [#allocation15 + $0x1], 0  ;;  %s2346_s8 = smov 0   ;;  %s2348_s5 = smov 0  }
  0x1c   :  { %s2350_s9 = smov 0   ;;  %s2352_s30 = smov 0  }
  0x1d LB: > { %2953 = sst [smem:[#allocation22_spill]] %s2177_s8  ;;  %s2367_s3 = sadd.s32 4294967295, %s2189_s30   ;;  %s2189_s30 = sphi %s2352_s30, %s2987_s30   ;;  %s2185_s9 = sphi %s2350_s9, %s2989_s9   ;;  %s2181_s5 = sphi %s2348_s5, %s2991_s5   ;;  %s2177_s8 = sphi %s2346_s8, %s2990_s8  }
  0x1e   : > { %2954 = sst [smem:[#allocation23_spill]] %s2185_s9  ;;  %s1761_s6 = sadd.s32 4294967294, %s2189_s30  }
  0x1f   : > { %2955 = sst [smem:[#allocation24_spill]] %s2189_s30  ;;  %s2371_s10 = sadd.s32 1, %s2189_s30  }
  0x20   : > { %2956 = sst [smem:[#allocation25_spill]] %s2371_s10  ;;  %s628_s0 = sadd.s32 1, %s2185_s9 }
  0x21   : > { %s625_s11 = ssub.s32 %s2189_s30, %s2371_s10  ;;  %p638_p0 = scmp.ne.s32.totalorder %s2185_s9, %s2181_s5 }
  0x22   : > { %p626_p1 = scmp.eq.s32.totalorder %s625_s11, 0  ;;  %p639_p2 = scmp.eq.s32.totalorder %s2367_s3, 1 }
  0x23   : > { %p644_p3 = scmp.ne.s32.totalorder %s2181_s5, %s2177_s8  ;;  %p645_p4 = scmp.eq.s32.totalorder %s1761_s6, 1 }
  0x24   : > { %s2382_s29 = scalar_select %p626_p1, %s2185_s9, %s628_s0  }
  0x25   : > { %p2384_p5 = por %p639_p2, %p638_p0  ;;  %p2388_p6 = por %p645_p4, %p644_p3 }
  0x26   : > { %2957 = sst [smem:[#allocation26_spill]] %s2382_s29  ;;  %p1762_p7 = scmp.ge.s32.totalorder %s2189_s30, 1 }
  0x27   : > { %s2958_s2 = scalar_select %p2384_p5, 1, 0 }
  0x28   : > { %s2960_s7 = scalar_select %p2388_p6, 1, 0 }
  0x29   : > { %2959 = sst [smem:[#allocation27_spill]] %s2958_s2  ;;  %p678_p8 = scmp.lt.s32.totalorder %s2189_s30, 3 }
  0x2a   : > { %2961 = sst [smem:[#allocation28_spill]] %s2960_s7  ;;  %p1844_p9 = scmp.eq.s32.totalorder %s2367_s3, 0 }
  0x2b   : > { %p2395_p10 = pnand %p1762_p7, %p678_p8  ;;  %s2963_s6 = sld [smem:[#allocation33_spill]] }
  0x2c   : > { %s2191_s11 = smov [#allocation5]   ;;  %s2965_s14 = sld [smem:[#allocation42_spill]] }
  0x2d   : > { %p1818_p11 = pneg %p2395_p10  ;;  %s711_s29 = sshll.u32 %s2191_s11, 4  ;;  %s712_s29 = int_to_ptr.vmem [resolvable:$true] %s711_s29 }
  0x2e   : > { %s2192_s1 = smov 128   ;;  %s2193_s4 = smov 8  }
  0x2f   : > { %p2406_p12 = pnand %p1844_p9, %p1818_p11  ;;  %s2966_s27 = sld [smem:[#allocation30_spill]] }
  0x30   : > { %s2195_s10 = smov [#allocation2]   ;;  %s2197_s23 = smov 16  }
  0x31   : > { %s709_s0 = sshll.u32 %s2963_s6, 4  ;;  %s2194_s6 = smov [#allocation8]   ;;  %s710_s0 = int_to_ptr.hbm [resolvable:$true] %s709_s0 }
  0x32   : > { %s761_s8 = sshll.u32 %s2965_s14, 4  ;;  %s763_s11 = sshll.u32 %s2194_s6, 4  ;;  %s762_s8 = int_to_ptr.hbm [resolvable:$true] %s761_s8  ;;  %s764_s11 = int_to_ptr.vmem [resolvable:$true] %s763_s11 }
  0x33   : > { %1824 = dma.hbm_to_vmem [thread:$0]  (!%p2406_p12), %s710_s0, 4096, %s712_s29, [#allocation6], %s2192_s1, %s2192_s1, %s2193_s4  }
  0x34   : > { %1830 = dma.hbm_to_vmem [thread:$0]  (!%p2406_p12), %s762_s8, 1024, %s764_s11, [#allocation9], %s2192_s1, %s2192_s1, %s2193_s4  }
  0x35   : > { %s689_s28 = sshll.u32 %s2966_s27, 4  ;;  %s691_s7 = sshll.u32 %s2195_s10, 4  ;;  %s690_s28 = int_to_ptr.hbm [resolvable:$true] %s689_s28  ;;  %s692_s7 = int_to_ptr.vmem [resolvable:$true] %s691_s7 }
  0x36   : > { %s2967_s29 = sld [smem:[#allocation34_spill]]  ;;  %s2196_s6 = smov 256  }
  0x37   : > { %1821 = dma.hbm_to_vmem [thread:$0]  (!%p2406_p12), %s690_s28, 2048, %s692_s7, [#allocation3], %s2196_s6, %s2196_s6, %s2197_s23  }
  0x38   : > { %s2198_s26 = smov [#allocation7]   ;;  %s778_s8 = sshll.u32 %s2902_s16, 4  ;;  %s779_s8 = int_to_ptr.hbm [resolvable:$true] %s778_s8 }
  0x39   : > { %s725_s27 = sshll.u32 %s2198_s26, 4  ;;  %s813_s11 = sshll.u32 %s2910_s24, 4  ;;  %s726_s27 = int_to_ptr.vmem [resolvable:$true] %s725_s27  ;;  %s814_s11 = int_to_ptr.hbm [resolvable:$true] %s813_s11 }
  0x3a   : > { %s2199_s23 = smov [#allocation10]   ;;  %s2200_s21 = smov [#allocation11]  }
  0x3b   : > { %s780_s28 = sshll.u32 %s2199_s23, 4  ;;  %s815_s10 = sshll.u32 %s2200_s21, 4  ;;  %s781_s28 = int_to_ptr.vmem [resolvable:$true] %s780_s28  ;;  %s816_s10 = int_to_ptr.vmem [resolvable:$true] %s815_s10 }
  0x3c   : > { %s723_s0 = sshll.u32 %s2967_s29, 4  ;;  %843 = sbr.rel (%p2395_p10) target bundleno = 1446 (0x5a6), region = 128  ;;  %s724_s0 = int_to_ptr.hbm [resolvable:$true] %s723_s0 }
  0x3d   : > { %1827 = dma.hbm_to_vmem [thread:$0]  (!%p2406_p12), %s724_s0, 4096, %s726_s27, [#allocation6], %s2192_s1, %s2192_s1, %s2193_s4  }
  0x3e   : > { %1833 = dma.hbm_to_vmem [thread:$0]  (!%p2406_p12), %s779_s8, 1024, %s781_s28, [#allocation9], %s2192_s1, %s2192_s1, %s2193_s4  }
  0x3f   : > { %1836 = dma.hbm_to_vmem [thread:$0]  (!%p2406_p12), %s814_s11, 512, %s816_s10, [#allocation12], %s2192_s1, %s2192_s1, %s2193_s4  }
  0x41   : > { %2152 = dma.done.wait (%p1844_p9), [#allocation3], 2048  }
  0x42   : > { %2154 = vsyncadd (%p1844_p9), [#allocation3], 4294965248 }
  0x43   : > { %2156 = dma.done.wait (%p1844_p9), [#allocation6], 8192  }
  0x44   : > { %2158 = vsyncadd (%p1844_p9), [#allocation6], 4294959104 }
  0x45   : > { %2160 = dma.done.wait (%p1844_p9), [#allocation9], 2048  }
  0x46   : > { %2162 = vsyncadd (%p1844_p9), [#allocation9], 4294965248 }
  0x47   : > { %2164 = dma.done.wait (%p1844_p9), [#allocation12], 512  }
  0x48   : > { %2166 = vsyncadd (%p1844_p9), [#allocation12], 4294966784  ;;  %v962_v0 = vld [vmem:[#allocation2 + $0x70] sm:$0xff]  ;;  %v963_v1 = vld [vmem:[#allocation2 + $0x78] sm:$0xff]  ;;  %p944_p13 = scmp.lt.s32.totalorder %s2367_s3, 1  ;;  %s2968_s1 = sld [smem:[#allocation32_spill]] }
  0x49   : > { %v960_v2 = vld [vmem:[#allocation2 + $0x60] sm:$0xff]  ;;  %982 = vmatpush.msra.mxu0 %v962_v0  ;;  %1002 = vmatpush.msra.mxu1 %v963_v1  ;;  %v961_v3 = vld [vmem:[#allocation2 + $0x68] sm:$0xff]  ;;  %v958_v4 = vld [vmem:[#allocation2 + $0x50] sm:$0xff]  ;;  %s2969_s10 = sld [smem:[#allocation29_spill]]  ;;  %vm970_vm0 = vcmask 523264   ;;  %vm1477_vm1 = vcmask 261120  }
  0x4a   : > { %v959_v5 = vld [vmem:[#allocation2 + $0x58] sm:$0xff]  ;;  %v956_v6 = vld [vmem:[#allocation2 + $0x40] sm:$0xff]  ;;  %v957_v7 = vld [vmem:[#allocation2 + $0x48] sm:$0xff]  ;;  %s2475_s4 = scalar_select %p944_p13, %s2367_s3, 1  ;;  %vm1559_vm2 = vcmask 253952  }
  0x4b   : > { %983 = vmatpush.msra.mxu0 %v960_v2  ;;  %1003 = vmatpush.msra.mxu1 %v961_v3  ;;  %v954_v8 = vld [vmem:[#allocation2 + $0x30] sm:$0xff]  ;;  %v955_v10 = vld [vmem:[#allocation2 + $0x38] sm:$0xff]  ;;  %v952_v15 = vld [vmem:[#allocation2 + $0x20] sm:$0xff]  ;;  %s2971_s2 = sld [smem:[#allocation31_spill]]  ;;  %s2831_s6 = sand.u32 1, %s2181_s5  }
  0x4c   : > { %v953_v16 = vld [vmem:[#allocation2 + $0x28] sm:$0xff]  ;;  %v950_v19 = vld [vmem:[#allocation2 + $0x10] sm:$0xff]  ;;  %v951_v20 = vld [vmem:[#allocation2 + $0x18] sm:$0xff]  ;;  %s2972_s12 = sld [smem:[#allocation37_spill]]  ;;  %s943_s30 = scalar_lea.vmem [#allocation14], %s2831_s6 }
  0x4d   : > { %984 = vmatpush.msra.mxu0 %v958_v4  ;;  %1004 = vmatpush.msra.mxu1 %v959_v5  ;;  %v948_v23 = vld [vmem:[#allocation2] sm:$0xff]  ;;  %v949_v24 = vld [vmem:[#allocation2 + $0x8] sm:$0xff]  ;;  %v1103_v28 = vld [vmem:[#allocation5 + $0x78] sm:$0xff]  ;;  %s2973_s7 = sld [smem:[#allocation39_spill]]  ;;  %s1596_s21 = scalar_lea.sflag [#allocation15], %s2831_s6 }
  0x4e   : > { %v1031_v9 = vld [vmem:[%s2968_s1 + $0x78] sm:$0xff]  ;;  %v1030_v12 = vld [vmem:[%s2968_s1 + $0x70] sm:$0xff]  ;;  %v1029_v14 = vld [vmem:[%s2968_s1 + $0x68] sm:$0xff]  ;;  %s2975_s27 = sld [smem:[#allocation41_spill]] }
  0x4f   : > { %1048 = vmatpush.msra.mxu2 %v1031_v9  ;;  %v1047_v11 = vld [vmem:[%s2968_s1 + $0xf8] sm:$0xff]  ;;  %985 = vmatpush.msra.mxu0 %v956_v6  ;;  %v1046_v13 = vld [vmem:[%s2968_s1 + $0xf0] sm:$0xff]  ;;  %v1045_v17 = vld [vmem:[%s2968_s1 + $0xe8] sm:$0xff]  ;;  %s946_s9 = scalar_lea.vmem %s2969_s10, %s2475_s4  ;;  %s2970_s10 = sld [smem:[#allocation35_spill]] }
  0x50   : > { %1005 = vmatpush.msra.mxu1 %v957_v7  ;;  %1068 = vmatpush.msra.mxu3 %v1047_v11  ;;  %v1028_v18 = vld [vmem:[%s2968_s1 + $0x60] sm:$0xff]  ;;  %v1027_v22 = vld [vmem:[%s2968_s1 + $0x58] sm:$0xff]  ;;  %v1026_v27 = vld [vmem:[%s2968_s1 + $0x50] sm:$0xff]  ;;  %s2974_s4 = sld [smem:[#allocation36_spill]] }
  0x51   : > { %1049 = vmatpush.msra.mxu2 %v1030_v12  ;;  %986 = vmatpush.msra.mxu0 %v954_v8  ;;  %v1044_v21 = vld [vmem:[%s2968_s1 + $0xe0] sm:$0xff]  ;;  %v1043_v26 = vld [vmem:[%s2968_s1 + $0xd8] sm:$0xff]  ;;  %v1042_v30 = vld [vmem:[%s2968_s1 + $0xd0] sm:$0xff]  ;;  %s2976_s14 = sld [smem:[#allocation38_spill]] }
  0x52   : > { %1006 = vmatpush.msra.mxu1 %v955_v10  ;;  %1069 = vmatpush.msra.mxu3 %v1046_v13  ;;  %v947_v25 = vld [vmem:[%s946_s9] sm:$0x1]  ;;  %v1119_v29 = vld [vmem:[#allocation5 + $0xf8] sm:$0xff]  ;;  %v1025_v31 = vld [vmem:[%s2968_s1 + $0x48] sm:$0xff]  ;;  %s2977_s23 = sld [smem:[#allocation40_spill]] }
  0x53   : > { %1050 = vmatpush.msra.mxu2 %v1029_v14  ;;  %987 = vmatpush.msra.mxu0 %v952_v15  ;;  %v1102_v32 = vld [vmem:[#allocation5 + $0x70] sm:$0xff]  ;;  %v1041_v34 = vld [vmem:[%s2968_s1 + $0xc8] sm:$0xff]  ;;  %v1024_v35 = vld [vmem:[%s2968_s1 + $0x40] sm:$0xff]  ;;  %s2978_s9 = sld [smem:[#allocation43_spill]] }
  0x54   : > { %1007 = vmatpush.msra.mxu1 %v953_v16  ;;  %1070 = vmatpush.msra.mxu3 %v1045_v17  ;;  %v1118_v33 = vld [vmem:[#allocation5 + $0xf0] sm:$0xff]  ;;  %v1101_v36 = vld [vmem:[#allocation5 + $0x68] sm:$0xff]  ;;  %v1040_v38 = vld [vmem:[%s2968_s1 + $0xc0] sm:$0xff] }
  0x55   : > { %1051 = vmatpush.msra.mxu2 %v1028_v18  ;;  %988 = vmatpush.msra.mxu0 %v950_v19  ;;  %v1117_v37 = vld [vmem:[#allocation5 + $0xe8] sm:$0xff]  ;;  %v1023_v39 = vld [vmem:[%s2968_s1 + $0x38] sm:$0xff]  ;;  %v1100_v40 = vld [vmem:[#allocation5 + $0x60] sm:$0xff] }
  0x56   : > { %1008 = vmatpush.msra.mxu1 %v951_v20  ;;  %1071 = vmatpush.msra.mxu3 %v1044_v21  ;;  %v1116_v41 = vld [vmem:[#allocation5 + $0xe0] sm:$0xff]  ;;  %v1039_v42 = vld [vmem:[%s2968_s1 + $0xb8] sm:$0xff]  ;;  %v1022_v43 = vld [vmem:[%s2968_s1 + $0x30] sm:$0xff] }
  0x57   : > { %1052 = vmatpush.msra.mxu2 %v1027_v22  ;;  %989 = vmatpush.msra.mxu0 %v948_v23  ;;  %v1099_v44 = vld [vmem:[#allocation5 + $0x58] sm:$0xff]  ;;  %v1038_v46 = vld [vmem:[%s2968_s1 + $0xb0] sm:$0xff]  ;;  %v1021_v47 = vld [vmem:[%s2968_s1 + $0x28] sm:$0xff] }
  0x58   : > { %1009 = vmatpush.msra.mxu1 %v949_v24  ;;  %1777 = vmatmul.msk.f32.vlgmr.msra.gmra.mxu0 %vm970_vm0, %v947_v25  ;;  %v1115_v45 = vld [vmem:[#allocation5 + $0xd8] sm:$0xff]  ;;  %v1098_v48 = vld [vmem:[#allocation5 + $0x50] sm:$0xff]  ;;  %v1037_v50 = vld [vmem:[%s2968_s1 + $0xa8] sm:$0xff] }
  0x59   : > { %1778 = vmatmul.msk.f32.vlgmr.msra.gmra.mxu1 %vm970_vm0, %v947_v25  ;;  %1072 = vmatpush.msra.mxu3 %v1043_v26  ;;  %v1114_v49 = vld [vmem:[#allocation5 + $0xd0] sm:$0xff]  ;;  %v1020_v51 = vld [vmem:[%s2968_s1 + $0x20] sm:$0xff]  ;;  %v1097_v52 = vld [vmem:[#allocation5 + $0x48] sm:$0xff] }
  0x5a   : > { %1053 = vmatpush.msra.mxu2 %v1026_v27  ;;  %1120 = vmatpush.msrb.mxu0 %v1103_v28  ;;  %v1113_v53 = vld [vmem:[#allocation5 + $0xc8] sm:$0xff]  ;;  %v1036_v54 = vld [vmem:[%s2968_s1 + $0xa0] sm:$0xff]  ;;  %v1019_v55 = vld [vmem:[%s2968_s1 + $0x18] sm:$0xff] }
  0x5b   : > { %1140 = vmatpush.msrb.mxu1 %v1119_v29  ;;  %1073 = vmatpush.msra.mxu3 %v1042_v30  ;;  %v1096_v56 = vld [vmem:[#allocation5 + $0x40] sm:$0xff]  ;;  %v1035_v58 = vld [vmem:[%s2968_s1 + $0x98] sm:$0xff]  ;;  %v1018_v59 = vld [vmem:[%s2968_s1 + $0x10] sm:$0xff] }
  0x5c   : > { %1054 = vmatpush.msra.mxu2 %v1025_v31  ;;  %1121 = vmatpush.msrb.mxu0 %v1102_v32  ;;  %v1112_v57 = vld [vmem:[#allocation5 + $0xc0] sm:$0xff]  ;;  %v1095_v60 = vld [vmem:[#allocation5 + $0x38] sm:$0xff]  ;;  %v1034_v62 = vld [vmem:[%s2968_s1 + $0x90] sm:$0xff] }
  0x5d   : > { %1141 = vmatpush.msrb.mxu1 %v1118_v33  ;;  %1074 = vmatpush.msra.mxu3 %v1041_v34  ;;  %v1111_v61 = vld [vmem:[#allocation5 + $0xb8] sm:$0xff]  ;;  %v1017_v63 = vld [vmem:[%s2968_s1 + $0x8] sm:$0xff]  ;;  %v1094_v0 = vld [vmem:[#allocation5 + $0x30] sm:$0xff] }
  0x5e   : > { %1055 = vmatpush.msra.mxu2 %v1024_v35  ;;  %1122 = vmatpush.msrb.mxu0 %v1101_v36  ;;  %v1110_v1 = vld [vmem:[#allocation5 + $0xb0] sm:$0xff]  ;;  %v1033_v2 = vld [vmem:[%s2968_s1 + $0x88] sm:$0xff]  ;;  %v1016_v3 = vld [vmem:[%s2968_s1] sm:$0xff] }
  0x5f   : > { %1142 = vmatpush.msrb.mxu1 %v1117_v37  ;;  %1075 = vmatpush.msra.mxu3 %v1040_v38  ;;  %v1176_v4 = vld [vmem:[#allocation7 + $0x78] sm:$0xff]  ;;  %v1093_v5 = vld [vmem:[#allocation5 + $0x28] sm:$0xff]  ;;  %v1032_v6 = vld [vmem:[%s2968_s1 + $0x80] sm:$0xff] }
  0x60   : > { %1056 = vmatpush.msra.mxu2 %v1023_v39  ;;  %1123 = vmatpush.msrb.mxu0 %v1100_v40  ;;  %v1109_v7 = vld [vmem:[#allocation5 + $0xa8] sm:$0xff]  ;;  %v1192_v8 = vld [vmem:[#allocation7 + $0xf8] sm:$0xff]  ;;  %v1175_v9 = vld [vmem:[#allocation7 + $0x70] sm:$0xff] }
  0x61   : > { %1143 = vmatpush.msrb.mxu1 %v1116_v41  ;;  %1076 = vmatpush.msra.mxu3 %v1039_v42  ;;  %v1092_v10 = vld [vmem:[#allocation5 + $0x20] sm:$0xff]  ;;  %v1191_v12 = vld [vmem:[#allocation7 + $0xf0] sm:$0xff]  ;;  %v1174_v13 = vld [vmem:[#allocation7 + $0x68] sm:$0xff] }
  0x62   : > { %1057 = vmatpush.msra.mxu2 %v1022_v43  ;;  %1124 = vmatpush.msrb.mxu0 %v1099_v44  ;;  %v1108_v11 = vld [vmem:[#allocation5 + $0xa0] sm:$0xff]  ;;  %v1091_v14 = vld [vmem:[#allocation5 + $0x18] sm:$0xff]  ;;  %v1190_v16 = vld [vmem:[#allocation7 + $0xe8] sm:$0xff] }
  0x63   : > { %1144 = vmatpush.msrb.mxu1 %v1115_v45  ;;  %1077 = vmatpush.msra.mxu3 %v1038_v46  ;;  %v1107_v15 = vld [vmem:[#allocation5 + $0x98] sm:$0xff]  ;;  %v1173_v17 = vld [vmem:[#allocation7 + $0x60] sm:$0xff]  ;;  %v1171_v21 = vld [vmem:[#allocation7 + $0x50] sm:$0xff] }
  0x64   : > { %1058 = vmatpush.msra.mxu2 %v1021_v47  ;;  %1125 = vmatpush.msrb.mxu0 %v1098_v48  ;;  %v1189_v18 = vld [vmem:[#allocation7 + $0xe0] sm:$0xff]  ;;  %v1172_v19 = vld [vmem:[#allocation7 + $0x58] sm:$0xff]  ;;  %v1187_v22 = vld [vmem:[#allocation7 + $0xd0] sm:$0xff] }
  0x65   : > { %1145 = vmatpush.msrb.mxu1 %v1114_v49  ;;  %1078 = vmatpush.msra.mxu3 %v1037_v50  ;;  %v1188_v20 = vld [vmem:[#allocation7 + $0xd8] sm:$0xff]  ;;  %v1170_v23 = vld [vmem:[#allocation7 + $0x48] sm:$0xff]  ;;  %v1169_v25 = vld [vmem:[#allocation7 + $0x40] sm:$0xff] }
  0x66   : > { %1059 = vmatpush.msra.mxu2 %v1020_v51  ;;  %1126 = vmatpush.msrb.mxu0 %v1097_v52  ;;  %v1186_v24 = vld [vmem:[#allocation7 + $0xc8] sm:$0xff]  ;;  %v1185_v26 = vld [vmem:[#allocation7 + $0xc0] sm:$0xff]  ;;  %v1168_v27 = vld [vmem:[#allocation7 + $0x38] sm:$0xff] }
  0x67   : > { %1146 = vmatpush.msrb.mxu1 %v1113_v53  ;;  %1079 = vmatpush.msra.mxu3 %v1036_v54  ;;  %v1184_v28 = vld [vmem:[#allocation7 + $0xb8] sm:$0xff]  ;;  %v1090_v29 = vld [vmem:[#allocation5 + $0x10] sm:$0xff]  ;;  %v1089_v33 = vld [vmem:[#allocation5 + $0x8] sm:$0xff] }
  0x68   : > { %1060 = vmatpush.msra.mxu2 %v1019_v55  ;;  %1127 = vmatpush.msrb.mxu0 %v1096_v56  ;;  %v1106_v30 = vld [vmem:[#allocation5 + $0x90] sm:$0xff]  ;;  %v1105_v34 = vld [vmem:[#allocation5 + $0x88] sm:$0xff]  ;;  %v1088_v37 = vld [vmem:[#allocation5] sm:$0xff] }
  0x69   : > { %1147 = vmatpush.msrb.mxu1 %v1112_v57  ;;  %1080 = vmatpush.msra.mxu3 %v1035_v58  ;;  %v1167_v31 = vld [vmem:[#allocation7 + $0x30] sm:$0xff]  ;;  %v1166_v35 = vld [vmem:[#allocation7 + $0x28] sm:$0xff]  ;;  %v1104_v38 = vld [vmem:[#allocation5 + $0x80] sm:$0xff] }
  0x6a   : > { %1061 = vmatpush.msra.mxu2 %v1018_v59  ;;  %1128 = vmatpush.msrb.mxu0 %v1095_v60  ;;  %v1183_v32 = vld [vmem:[#allocation7 + $0xb0] sm:$0xff]  ;;  %v1182_v36 = vld [vmem:[#allocation7 + $0xa8] sm:$0xff]  ;;  %v1165_v39 = vld [vmem:[#allocation7 + $0x20] sm:$0xff] }
  0x6b   : > { %1148 = vmatpush.msrb.mxu1 %v1111_v61  ;;  %1081 = vmatpush.msra.mxu3 %v1034_v62  ;;  %v1181_v40 = vld [vmem:[#allocation7 + $0xa0] sm:$0xff]  ;;  %v1164_v41 = vld [vmem:[#allocation7 + $0x18] sm:$0xff]  ;;  %v1163_v43 = vld [vmem:[#allocation7 + $0x10] sm:$0xff] }
  0x6c   : > { %1062 = vmatpush.msra.mxu2 %v1017_v63  ;;  %1129 = vmatpush.msrb.mxu0 %v1094_v0  ;;  %v1180_v42 = vld [vmem:[#allocation7 + $0x98] sm:$0xff]  ;;  %v1179_v44 = vld [vmem:[#allocation7 + $0x90] sm:$0xff]  ;;  %v1162_v45 = vld [vmem:[#allocation7 + $0x8] sm:$0xff] }
  0x6d   : > { %1149 = vmatpush.msrb.mxu1 %v1110_v1  ;;  %1082 = vmatpush.msra.mxu3 %v1033_v2  ;;  %v1178_v46 = vld [vmem:[#allocation7 + $0x88] sm:$0xff]  ;;  %v1161_v47 = vld [vmem:[#allocation7] sm:$0xff]  ;;  %v1249_v49 = vld [vmem:[%s2970_s10 + $0x78] sm:$0xff] }
  0x6e   : > { %1063 = vmatpush.msra.mxu2 %v1016_v3  ;;  %1130 = vmatpush.msrb.mxu0 %v1093_v5  ;;  %v1177_v48 = vld [vmem:[#allocation7 + $0x80] sm:$0xff]  ;;  %v1248_v50 = vld [vmem:[%s2970_s10 + $0x70] sm:$0xff]  ;;  %v1247_v51 = vld [vmem:[%s2970_s10 + $0x68] sm:$0xff] }
  0x6f   : > { %1083 = vmatpush.msra.mxu3 %v1032_v6  ;;  %1150 = vmatpush.msrb.mxu1 %v1109_v7  ;;  %v1246_v52 = vld [vmem:[%s2970_s10 + $0x60] sm:$0xff]  ;;  %v1245_v53 = vld [vmem:[%s2970_s10 + $0x58] sm:$0xff]  ;;  %v1244_v54 = vld [vmem:[%s2970_s10 + $0x50] sm:$0xff] }
  0x70   : > { %1193 = vmatpush.msrb.mxu2 %v1176_v4  ;;  %1131 = vmatpush.msrb.mxu0 %v1092_v10  ;;  %v964_v55 = vld [vmem:[%s2971_s2] sm:$0x3]  ;;  %v1243_v0 = vld [vmem:[%s2970_s10 + $0x48] sm:$0xff]  ;;  %v1241_v2 = vld [vmem:[%s2970_s10 + $0x38] sm:$0xff]  ;;  %s2981_s2 = sld [smem:[#allocation47_spill]] }
  0x71   : > { %1213 = vmatpush.msrb.mxu3 %v1192_v8  ;;  %1151 = vmatpush.msrb.mxu1 %v1108_v11  ;;  %v966_v56 = vperm.slane %v964_v55, 0  ;;  %v967_v57 = vperm.slane %v964_v55, 1  ;;  %v1242_v1 = vld [vmem:[%s2970_s10 + $0x40] sm:$0xff]  ;;  %v1240_v3 = vld [vmem:[%s2970_s10 + $0x30] sm:$0xff]  ;;  %v1239_v4 = vld [vmem:[%s2970_s10 + $0x28] sm:$0xff] }
  0x72   : > { %1194 = vmatpush.msrb.mxu2 %v1175_v9  ;;  %1132 = vmatpush.msrb.mxu0 %v1091_v14  ;;  %v1238_v5 = vld [vmem:[%s2970_s10 + $0x20] sm:$0xff]  ;;  %v1237_v6 = vld [vmem:[%s2970_s10 + $0x18] sm:$0xff]  ;;  %v1236_v7 = vld [vmem:[%s2970_s10 + $0x10] sm:$0xff] }
  0x73   : > { %1214 = vmatpush.msrb.mxu3 %v1191_v12  ;;  %1152 = vmatpush.msrb.mxu1 %v1107_v15  ;;  %v1235_v8 = vld [vmem:[%s2970_s10 + $0x8] sm:$0xff]  ;;  %v1234_v9 = vld [vmem:[%s2970_s10] sm:$0xff]  ;;  %v1279_v10 = vld [vmem:[%s2972_s12 + $0x38] sm:$0xff] }
  0x74   : > { %1195 = vmatpush.msrb.mxu2 %v1174_v13  ;;  %1133 = vmatpush.msrb.mxu0 %v1090_v29  ;;  %v1278_v11 = vld [vmem:[%s2972_s12 + $0x30] sm:$0xff]  ;;  %v1277_v12 = vld [vmem:[%s2972_s12 + $0x28] sm:$0xff]  ;;  %v1276_v13 = vld [vmem:[%s2972_s12 + $0x20] sm:$0xff] }
  0x75   : > { %1215 = vmatpush.msrb.mxu3 %v1190_v16  ;;  %1153 = vmatpush.msrb.mxu1 %v1106_v30  ;;  %v1275_v14 = vld [vmem:[%s2972_s12 + $0x18] sm:$0xff]  ;;  %v1274_v15 = vld [vmem:[%s2972_s12 + $0x10] sm:$0xff]  ;;  %v1273_v16 = vld [vmem:[%s2972_s12 + $0x8] sm:$0xff] }
  0x76   : > { %1196 = vmatpush.msrb.mxu2 %v1173_v17  ;;  %1134 = vmatpush.msrb.mxu0 %v1089_v33  ;;  %v1272_v17 = vld [vmem:[%s2972_s12] sm:$0xff]  ;;  %v1313_v29 = vld [vmem:[%s2973_s7 + $0x48] sm:$0xff]  ;;  %s1617_s11 = scalar_lea.hbm %s2981_s2, %s2367_s3  ;;  %s2099_s1 = scalar_lea.hbm %s2981_s2, 2 }
  0x77   : > { %1216 = vmatpush.msrb.mxu3 %v1189_v18  ;;  %1154 = vmatpush.msrb.mxu1 %v1105_v34  ;;  %v1319_v18 = vld [vmem:[%s2973_s7 + $0x78] sm:$0xff]  ;;  %v1312_v33 = vld [vmem:[%s2973_s7 + $0x40] sm:$0xff]  ;;  %s1621_s28 = sshll.u32 %s1617_s11, 4  ;;  %s1622_s28 = int_to_ptr.hbm [resolvable:$true] %s1621_s28 }
  0x78   : > { %1197 = vmatpush.msrb.mxu2 %v1172_v19  ;;  %1135 = vmatpush.msrb.mxu0 %v1088_v37  ;;  %v1318_v19 = vld [vmem:[%s2973_s7 + $0x70] sm:$0xff]  ;;  %v1347_v55 = vld [vmem:[%s2975_s27 + $0x20] sm:$0xff] }
  0x79   : > { %1217 = vmatpush.msrb.mxu3 %v1188_v20  ;;  %1155 = vmatpush.msrb.mxu1 %v1104_v38  ;;  %v1317_v20 = vld [vmem:[%s2973_s7 + $0x68] sm:$0xff]  ;;  %v1310_v38 = vld [vmem:[%s2973_s7 + $0x30] sm:$0xff] }
  0x7a   : > { %1198 = vmatpush.msrb.mxu2 %v1171_v21  ;;  %1251 = vmatpush.msra.mxu0 %v1249_v49  ;;  %v1350_v49 = vld [vmem:[%s2975_s27 + $0x38] sm:$0xff] }
  0x7b   : > { %1218 = vmatpush.msrb.mxu3 %v1187_v22  ;;  %1292 = vmatpush.msra.mxu1 %v1279_v10 }
  0x7c   : > { %1199 = vmatpush.msrb.mxu2 %v1170_v23  ;;  %1252 = vmatpush.msra.mxu0 %v1248_v50  ;;  %v1316_v23 = vld [vmem:[%s2973_s7 + $0x60] sm:$0xff]  ;;  %v1415_v50 = vld [vmem:[#allocation10 + $0x38] sm:$0xff] }
  0x7d   : > { %1219 = vmatpush.msrb.mxu3 %v1186_v24  ;;  %1293 = vmatpush.msra.mxu1 %v1278_v11  ;;  %v1315_v24 = vld [vmem:[%s2973_s7 + $0x58] sm:$0xff] }
  0x7e   : > { %1200 = vmatpush.msrb.mxu2 %v1169_v25  ;;  %1253 = vmatpush.msra.mxu0 %v1247_v51  ;;  %v1349_v51 = vld [vmem:[%s2975_s27 + $0x30] sm:$0xff] }
  0x7f   : > { %1220 = vmatpush.msrb.mxu3 %v1185_v26  ;;  %1294 = vmatpush.msra.mxu1 %v1277_v12  ;;  %v1380_v12 = vld [vmem:[#allocation8 + $0x20] sm:$0xff] }
  0x80   : > { %1201 = vmatpush.msrb.mxu2 %v1168_v27  ;;  %1254 = vmatpush.msra.mxu0 %v1246_v52  ;;  %v1314_v27 = vld [vmem:[%s2973_s7 + $0x50] sm:$0xff] }
  0x81   : > { %1221 = vmatpush.msrb.mxu3 %v1184_v28  ;;  %1295 = vmatpush.msra.mxu1 %v1276_v13  ;;  %v1414_v52 = vld [vmem:[#allocation10 + $0x30] sm:$0xff]  ;;  %v1379_v13 = vld [vmem:[#allocation8 + $0x18] sm:$0xff] }
  0x82   : > { %1202 = vmatpush.msrb.mxu2 %v1167_v31  ;;  %1255 = vmatpush.msra.mxu0 %v1245_v53  ;;  %v1348_v53 = vld [vmem:[%s2975_s27 + $0x28] sm:$0xff] }
  0x83   : > { %1222 = vmatpush.msrb.mxu3 %v1183_v32  ;;  %1296 = vmatpush.msra.mxu1 %v1275_v14  ;;  %v1378_v14 = vld [vmem:[#allocation8 + $0x10] sm:$0xff] }
  0x84   : > { %1203 = vmatpush.msrb.mxu2 %v1166_v35  ;;  %1256 = vmatpush.msra.mxu0 %v1244_v54  ;;  %v1413_v54 = vld [vmem:[#allocation10 + $0x28] sm:$0xff] }
  0x85   : > { %1223 = vmatpush.msrb.mxu3 %v1182_v36  ;;  %1297 = vmatpush.msra.mxu1 %v1274_v15  ;;  %v1311_v36 = vld [vmem:[%s2973_s7 + $0x38] sm:$0xff]  ;;  %v1377_v15 = vld [vmem:[#allocation8 + $0x8] sm:$0xff] }
  0x86   : > { %1204 = vmatpush.msrb.mxu2 %v1165_v39  ;;  %1257 = vmatpush.msra.mxu0 %v1243_v0  ;;  %v1309_v39 = vld [vmem:[%s2973_s7 + $0x28] sm:$0xff]  ;;  %v1408_v0 = vld [vmem:[#allocation10] sm:$0xff] }
  0x87   : > { %1224 = vmatpush.msrb.mxu3 %v1181_v40  ;;  %1298 = vmatpush.msra.mxu1 %v1273_v16  ;;  %v1308_v40 = vld [vmem:[%s2973_s7 + $0x20] sm:$0xff] }
  0x88   : > { %1205 = vmatpush.msrb.mxu2 %v1164_v41  ;;  %1258 = vmatpush.msra.mxu0 %v1242_v1  ;;  %v1307_v41 = vld [vmem:[%s2973_s7 + $0x18] sm:$0xff]  ;;  %v1376_v16 = vld [vmem:[#allocation8] sm:$0xff] }
  0x89   : > { %1225 = vmatpush.msrb.mxu3 %v1180_v42  ;;  %1299 = vmatpush.msra.mxu1 %v1272_v17  ;;  %v1306_v42 = vld [vmem:[%s2973_s7 + $0x10] sm:$0xff]  ;;  %v1383_v1 = vld [vmem:[#allocation8 + $0x38] sm:$0xff] }
  0x8a   : > { %1206 = vmatpush.msrb.mxu2 %v1163_v43  ;;  %1259 = vmatpush.msra.mxu0 %v1241_v2  ;;  %v1305_v43 = vld [vmem:[%s2973_s7 + $0x8] sm:$0xff]  ;;  %v1382_v2 = vld [vmem:[#allocation8 + $0x30] sm:$0xff]  ;;  %v1446_v17 = vld [vmem:[%s2904_s18 + $0x38] sm:$0xff] }
  0x8b   : > { %1226 = vmatpush.msrb.mxu3 %v1179_v44  ;;  %v1304_v44 = vld [vmem:[%s2973_s7] sm:$0xff] }
  0x8c   : > { %1207 = vmatpush.msrb.mxu2 %v1162_v45  ;;  %1260 = vmatpush.msra.mxu0 %v1240_v3  ;;  %v1250_v45 = vld [vmem:[%s2974_s4] sm:$0x1]  ;;  %v1381_v3 = vld [vmem:[#allocation8 + $0x28] sm:$0xff]  ;;  %s2979_s4 = sld [smem:[#allocation44_spill]] }
  0x8d   : > { %1227 = vmatpush.msrb.mxu3 %v1178_v46 }
  0x8e   : > { %1208 = vmatpush.msrb.mxu2 %v1161_v47  ;;  %1261 = vmatpush.msra.mxu0 %v1239_v4 }
  0x8f   : > { %1228 = vmatpush.msrb.mxu3 %v1177_v48 }
  0x90   : > { %1262 = vmatpush.msra.mxu0 %v1238_v5  ;;  %v1280_v5 = vld [vmem:[%s2976_s14] sm:$0x1] }
  0x92   : > { %1263 = vmatpush.msra.mxu0 %v1237_v6  ;;  %v1320_v6 = vld [vmem:[%s2977_s23] sm:$0x1]  ;;  %s1619_s23 = sshll.u32 %s943_s30, 4  ;;  %s1620_s23 = int_to_ptr.vmem [resolvable:$true] %s1619_s23 }
  0x94   : > { %1264 = vmatpush.msra.mxu0 %v1236_v7 }
  0x96   : > { %1265 = vmatpush.msra.mxu0 %v1235_v8 }
  0x98   : > { %1266 = vmatpush.msra.mxu0 %v1234_v9 }
  0xd5   : > { %v991_v58 = vpop.f32.mrf.mxu0 }
  0xd6   : > { %v1011_v59 = vpop.f32.mrf.mxu1  ;;  %v992_v60 = vadd.f32 %v991_v58, %v966_v56  ;;  %v1412_v56 = vld [vmem:[#allocation10 + $0x20] sm:$0xff]  ;;  %v1411_v58 = vld [vmem:[#allocation10 + $0x18] sm:$0xff] }
  0xd7   : > { %v1012_v61 = vadd.f32 %v1011_v59, %v967_v57  ;;  %v1346_v57 = vld [vmem:[%s2975_s27 + $0x18] sm:$0xff]  ;;  %v1345_v59 = vld [vmem:[%s2975_s27 + $0x10] sm:$0xff] }
  0xd8   : > { %v1014_v62 = vmax.f32 %v992_v60, 0.0  ;;  %v1410_v60 = vld [vmem:[#allocation10 + $0x10] sm:$0xff] }
  0xd9   : > { %v1015_v63 = vmax.f32 %v1012_v61, 0.0  ;;  %v1344_v61 = vld [vmem:[%s2975_s27 + $0x8] sm:$0xff] }
  0xda   : > { %1064 = vmatmul.f32.vlgmr.msra.gmra.mxu2 %v1014_v62  ;;  %1136 = vmatmul.f32.vlgmr.msrb.gmra.mxu0 %v1014_v62 }
  0xdb   : > { %1084 = vmatmul.f32.vlgmr.msra.gmra.mxu3 %v1015_v63  ;;  %1156 = vmatmul.f32.vlgmr.msrb.gmra.mxu1 %v1015_v63 }
  0xdc   : > { %1321 = vmatpush.msrb.mxu1 %v1319_v18  ;;  %1363 = vmatpush.msra.mxu2 %v1350_v49  ;;  %v1445_v18 = vld [vmem:[%s2904_s18 + $0x30] sm:$0xff]  ;;  %v1447_v49 = vld [vmem:[%s2905_s19] sm:$0x1] }
  0xdd   : > { %1425 = vmatpush.msrb.mxu0 %v1415_v50  ;;  %1396 = vmatpush.msra.mxu3 %v1383_v1 }
  0xde   : > { %1322 = vmatpush.msrb.mxu1 %v1318_v19  ;;  %1364 = vmatpush.msra.mxu2 %v1349_v51  ;;  %v1444_v19 = vld [vmem:[%s2904_s18 + $0x28] sm:$0xff] }
  0xdf   : > { %1426 = vmatpush.msrb.mxu0 %v1414_v52  ;;  %1397 = vmatpush.msra.mxu3 %v1382_v2 }
  0xe0   : > { %1323 = vmatpush.msrb.mxu1 %v1317_v20  ;;  %1365 = vmatpush.msra.mxu2 %v1348_v53  ;;  %v1443_v20 = vld [vmem:[%s2904_s18 + $0x20] sm:$0xff]  ;;  %v1535_v53 = vld [vmem:[#allocation11 + $0x18] sm:$0xff] }
  0xe1   : > { %1427 = vmatpush.msrb.mxu0 %v1413_v54  ;;  %1398 = vmatpush.msra.mxu3 %v1381_v3  ;;  %v1534_v54 = vld [vmem:[#allocation11 + $0x10] sm:$0xff] }
  0xe2   : > { %1209 = vmatmul.f32.vlgmr.msrb.gmra.mxu2 %v1014_v62  ;;  %1324 = vmatpush.msrb.mxu1 %v1316_v23  ;;  %v1409_v62 = vld [vmem:[#allocation10 + $0x8] sm:$0xff] }
  0xe3   : > { %1229 = vmatmul.f32.vlgmr.msrb.gmra.mxu3 %v1015_v63  ;;  %1366 = vmatpush.msra.mxu2 %v1347_v55  ;;  %v1343_v63 = vld [vmem:[%s2975_s27] sm:$0xff]  ;;  %v1533_v55 = vld [vmem:[#allocation11 + $0x8] sm:$0xff] }
  0xe4   : > { %1325 = vmatpush.msrb.mxu1 %v1315_v24  ;;  %1428 = vmatpush.msrb.mxu0 %v1412_v56  ;;  %v1532_v56 = vld [vmem:[#allocation11] sm:$0xff] }
  0xe5   : > { %1367 = vmatpush.msra.mxu2 %v1346_v57  ;;  %1399 = vmatpush.msra.mxu3 %v1380_v12  ;;  %v1564_v57 = vld [vmem:[%s2911_s25 + $0x18] sm:$0xff] }
  0xe6   : > { %1326 = vmatpush.msrb.mxu1 %v1314_v27  ;;  %1429 = vmatpush.msrb.mxu0 %v1411_v58  ;;  %v1440_v27 = vld [vmem:[%s2904_s18 + $0x8] sm:$0xff]  ;;  %v1563_v58 = vld [vmem:[%s2911_s25 + $0x10] sm:$0xff] }
  0xe7   : > { %1368 = vmatpush.msra.mxu2 %v1345_v59  ;;  %1400 = vmatpush.msra.mxu3 %v1379_v13  ;;  %v1562_v59 = vld [vmem:[%s2911_s25 + $0x8] sm:$0xff] }
  0xe8   : > { %1327 = vmatpush.msrb.mxu1 %v1313_v29  ;;  %1430 = vmatpush.msrb.mxu0 %v1410_v60  ;;  %v1475_v29 = vld [vmem:[%s2906_s20 + $0x18] sm:$0xff]  ;;  %v1561_v60 = vld [vmem:[%s2911_s25] sm:$0xff] }
  0xe9   : > { %1369 = vmatpush.msra.mxu2 %v1344_v61  ;;  %1401 = vmatpush.msra.mxu3 %v1378_v14 }
  0xea   : > { %1328 = vmatpush.msrb.mxu1 %v1312_v33  ;;  %1431 = vmatpush.msrb.mxu0 %v1409_v62  ;;  %v1508_v33 = vld [vmem:[%s2908_s22 + $0x38] sm:$0xff]  ;;  %v1476_v62 = vld [vmem:[%s2978_s9] sm:$0x1]  ;;  %s2093_s9 = sshra.s32 %s1622_s28, 4  ;;  %s2094_s9 = int_to_ptr.hbm [resolvable:$true] %s2093_s9 }
  0xeb   : > { %1370 = vmatpush.msra.mxu2 %v1343_v63  ;;  %1402 = vmatpush.msra.mxu3 %v1377_v15  ;;  %v1509_v63 = vld [vmem:[%s2979_s4] sm:$0x1]  ;;  %s2095_s29 = scalar_lea.hbm %s2094_s9, 1  ;;  %p2100_p3 = scmp.lt.s32.totalorder %s2094_s9, %s2981_s2 }
  0xec   : > { %1329 = vmatpush.msrb.mxu1 %v1311_v36  ;;  %1432 = vmatpush.msrb.mxu0 %v1408_v0  ;;  %v1384_v36 = vld [vmem:[%s2901_s15] sm:$0x1]  ;;  %p2096_p0 = scmp.ne.s32.totalorder %s2094_s9, %s2095_s29  ;;  %p2101_p4 = scmp.lt.s32.totalorder %s2099_s1, %s2095_s29 }
  0xed   : > { %1403 = vmatpush.msra.mxu3 %v1376_v16  ;;  %1459 = vmatpush.msrb.mxu2 %v1446_v17 }
  0xee   : > { %1330 = vmatpush.msrb.mxu1 %v1310_v38  ;;  %p2097_p1 = pnand %p2096_p0, %p2384_p5  ;;  %p2102_p7 = por %p2101_p4, %p2100_p3 }
  0xef   : > { %1460 = vmatpush.msrb.mxu2 %v1445_v18  ;;  %1493 = vmatpush.msrb.mxu3 %v1475_v29 }
  0xf0   : > { %1331 = vmatpush.msrb.mxu1 %v1309_v39  ;;  %p2098_p2 = pneg %p2097_p1 }
  0xf1   : > { %1461 = vmatpush.msrb.mxu2 %v1444_v19 }
  0xf2   : > { %1332 = vmatpush.msrb.mxu1 %v1308_v40  ;;  %p2103_p8 = pnand %p2102_p7, %p2098_p2 }
  0xf3   : > { %1462 = vmatpush.msrb.mxu2 %v1443_v20 }
  0xf4   : > { %1333 = vmatpush.msrb.mxu1 %v1307_v41 }
  0xf6   : > { %1334 = vmatpush.msrb.mxu1 %v1306_v42  ;;  %v1507_v42 = vld [vmem:[%s2908_s22 + $0x30] sm:$0xff] }
  0xf8   : > { %1335 = vmatpush.msrb.mxu1 %v1305_v43  ;;  %v1506_v43 = vld [vmem:[%s2908_s22 + $0x28] sm:$0xff] }
  0xfa   : > { %1336 = vmatpush.msrb.mxu1 %v1304_v44  ;;  %v1505_v44 = vld [vmem:[%s2908_s22 + $0x20] sm:$0xff] }
 0x157   : > { %v1137_v25 = vpop.f32.mrf.mxu0 }
 0x158   : > { %v1157_v26 = vpop.f32.mrf.mxu1 }
 0x159   : > { %v1158_v30 = vadd.f32 %v1157_v26, %v1137_v25  ;;  %v1442_v25 = vld [vmem:[%s2904_s18 + $0x18] sm:$0xff]  ;;  %v1441_v26 = vld [vmem:[%s2904_s18 + $0x10] sm:$0xff] }
 0x15a   : > { %1463 = vmatpush.msrb.mxu2 %v1442_v25 }
 0x15c   : > { %1464 = vmatpush.msrb.mxu2 %v1441_v26 }
 0x15d   : > { %v1065_v21 = vpop.f32.mrf.mxu2 }
 0x15e   : > { %v1085_v22 = vpop.f32.mrf.mxu3  ;;  %1465 = vmatpush.msrb.mxu2 %v1440_v27 }
 0x15f   : > { %v1086_v28 = vadd.f32 %v1085_v22, %v1065_v21  ;;  %v1351_v21 = vld [vmem:[%s2899_s13] sm:$0x1] }
 0x161   : > { %v1160_v34 = vmax.f32 %v1086_v28, %v1158_v30  ;;  %v1439_v28 = vld [vmem:[%s2904_s18] sm:$0xff]  ;;  %v1474_v30 = vld [vmem:[%s2906_s20 + $0x10] sm:$0xff] }
 0x162   : > { %1466 = vmatpush.msrb.mxu2 %v1439_v28  ;;  %1494 = vmatpush.msrb.mxu3 %v1474_v30 }
 0x165   : > { %v1210_v31 = vpop.f32.mrf.mxu2 }
 0x166   : > { %v1230_v32 = vpop.f32.mrf.mxu3 }
 0x167   : > { %v1231_v35 = vadd.f32 %v1230_v32, %v1210_v31  ;;  %v1473_v31 = vld [vmem:[%s2906_s20 + $0x8] sm:$0xff]  ;;  %v1472_v32 = vld [vmem:[%s2906_s20] sm:$0xff] }
 0x168   : > { %1495 = vmatpush.msrb.mxu3 %v1473_v31 }
 0x169   : > { %v1233_v37 = vmax.f32 %v1160_v34, %v1231_v35  ;;  %v1416_v34 = vld [vmem:[%s2903_s17] sm:$0x1] }
 0x16a   : > { %1496 = vmatpush.msrb.mxu3 %v1472_v32 }
 0x16b   : > { %1267 = vmatmul.f32.vlgmr.msra.gmra.mxu0 %v1233_v37 }
 0x16c   : > { %1551 = vmatpush.msra.mxu0 %v1535_v53 }
 0x16e   : > { %1552 = vmatpush.msra.mxu0 %v1534_v54 }
 0x170   : > { %1553 = vmatpush.msra.mxu0 %v1533_v55 }
 0x172   : > { %1554 = vmatpush.msra.mxu0 %v1532_v56 }
 0x1e8   : > { %v1268_v46 = vpop.f32.mrf.mxu0 }
 0x1e9   : > { %v1269_v47 = vadd.f32 %v1268_v46, %v1250_v45  ;;  %v1504_v45 = vld [vmem:[%s2908_s22 + $0x18] sm:$0xff]  ;;  %v1503_v46 = vld [vmem:[%s2908_s22 + $0x10] sm:$0xff] }
 0x1eb   : > { %v1271_v48 = vmax.f32 %v1269_v47, 0.0  ;;  %v1502_v47 = vld [vmem:[%s2908_s22 + $0x8] sm:$0xff] }
 0x1ed   : > { %1779 = vmatmul.msk.f32.vlgmr.msra.gmra.mxu1 %vm970_vm0, %v1271_v48  ;;  %v1501_v48 = vld [vmem:[%s2908_s22] sm:$0xff] }
 0x1ee   : > { %1581 = vmatpush.msra.mxu1 %v1564_v57 }
 0x1f0   : > { %1582 = vmatpush.msra.mxu1 %v1563_v58 }
 0x1f2   : > { %1583 = vmatpush.msra.mxu1 %v1562_v59 }
 0x1f4   : > { %1584 = vmatpush.msra.mxu1 %v1561_v60 }
 0x1f5   : > { %1337 = vmatmul.f32.vlgmr.msrb.gmra.mxu1 %v1233_v37 }
 0x26a   : > { %v1301_v4 = vpop.f32.mrf.mxu1 }
 0x26b   : > { %v1302_v8 = vadd.f32 %v1301_v4, %v1280_v5 }
 0x272   : > { %v1338_v7 = vpop.f32.mrf.mxu1 }
 0x273   : > { %v1339_v9 = vadd.f32 %v1338_v7, %v1320_v6 }
 0x275   : > { %v1341_v10 = vadd.f32 %v1339_v9, %v1302_v8 }
 0x277   : > { %v1342_v11 = vmax.f32 %v1341_v10, 0.0 }
 0x279   : > { %1780 = vmatmul.msk.f32.vlgmr.msra.gmra.mxu2 %vm970_vm0, %v1342_v11  ;;  %1782 = vmatmul.msk.f32.vlgmr.msrb.gmra.mxu0 %vm970_vm0, %v1342_v11 }
 0x2f6   : > { %v1434_v35 = vpop.f32.mrf.mxu0 }
 0x2f7   : > { %v1435_v38 = vadd.f32 %v1434_v35, %v1416_v34 }
 0x2fc   : > { %v1372_v22 = vpop.f32.mrf.mxu2 }
 0x2fd   : > { %v1373_v23 = vadd.f32 %v1372_v22, %v1351_v21 }
 0x2ff   : > { %v1375_v24 = vmax.f32 %v1373_v23, 0.0 }
 0x301   : > { %1781 = vmatmul.msk.f32.vlgmr.msra.gmra.mxu3 %vm970_vm0, %v1375_v24 }
 0x302   : > { %1518 = vmatpush.msra.mxu3 %v1508_v33 }
 0x304   : > { %1519 = vmatpush.msra.mxu3 %v1507_v42 }
 0x306   : > { %1520 = vmatpush.msra.mxu3 %v1506_v43 }
 0x308   : > { %1521 = vmatpush.msra.mxu3 %v1505_v44 }
 0x30a   : > { %1522 = vmatpush.msra.mxu3 %v1504_v45 }
 0x30c   : > { %1523 = vmatpush.msra.mxu3 %v1503_v46 }
 0x30e   : > { %1524 = vmatpush.msra.mxu3 %v1502_v47 }
 0x310   : > { %1525 = vmatpush.msra.mxu3 %v1501_v48 }
 0x384   : > { %v1405_v37 = vpop.f32.mrf.mxu3 }
 0x385   : > { %v1406_v39 = vadd.f32 %v1405_v37, %v1384_v36 }
 0x387   : > { %v1437_v40 = vadd.f32 %v1435_v38, %v1406_v39 }
 0x389   : > { %v1438_v41 = vmax.f32 %v1437_v40, 0.0 }
 0x38b   : > { %1783 = vmatmul.msk.f32.vlgmr.msrb.gmra.mxu2 %vm970_vm0, %v1438_v41 }
 0x40e   : > { %v1468_v50 = vpop.f32.mrf.mxu2 }
 0x40f   : > { %v1469_v51 = vadd.f32 %v1468_v50, %v1447_v49 }
 0x411   : > { %v1471_v52 = vmax.f32 %v1469_v51, 0.0 }
 0x413   : > { %1784 = vmatmul.msk.f32.vlgmr.msrb.gmra.mxu3 %vm1477_vm1, %v1471_v52 }
 0x41b   : > { %1785 = vmatmul.msk.f32.vlgmr.msra.gmra.mxu3 %vm970_vm0, %v1438_v41 }
 0x496   : > { %v1498_v61 = vpop.f32.mrf.mxu3 }
 0x497   : > { %v1499_v1 = vadd.f32 %v1498_v61, %v1476_v62 }
 0x49e   : > { %v1527_v0 = vpop.f32.mrf.mxu3 }
 0x49f   : > { %v1528_v2 = vadd.f32 %v1527_v0, %v1509_v63 }
 0x4a1   : > { %v1530_v3 = vadd.f32 %v1528_v2, %v1499_v1 }
 0x4a3   : > { %v1531_v4 = vmax.f32 %v1530_v3, 0.0 }
 0x4a5   : > { %1786 = vmatmul.msk.f32.vlgmr.msra.gmra.mxu0 %vm1477_vm1, %v1531_v4 }
 0x522   : > { %v1556_v5 = vpop.f32.mrf.mxu0 }
 0x523   : > { %1560 = vst.msk [vmem:[%s943_s30] sm:$0x1] %vm1559_vm2, %v1556_v5  ;;  %1787 = vmatmul.msk.f32.vlgmr.msra.gmra.mxu1 %vm1477_vm1, %v1556_v5 }
 0x524   : > { %2106 = shalt.err (!%p2103_p8)
}
 0x525   : > { %1815 = dma.vmem_to_hbm [thread:$0]  (%p2384_p5), %s1620_s23, 16, %s1622_s28, %s1596_s21   ;;  %vm1589_vm3 = vcmask 73728  }
 0x526   : > { %s2982_s14 = sld [smem:[#allocation46_spill]]  ;;  %s937_s10 = scalar_lea.vmem [#allocation13], %s2831_s6 }
 0x527   : > { %s2983_s12 = sld [smem:[#allocation45_spill]]  ;;  %s1606_s1 = sshll.u32 %s937_s10, 4  ;;  %s1607_s1 = int_to_ptr.vmem [resolvable:$true] %s1606_s1 }
 0x528   : > { %s1592_s9 = scalar_lea.sflag [#allocation4], %s2831_s6 }
 0x52c   : > { %s1604_s11 = scalar_lea.hbm %s2982_s14, %s2367_s3 }
 0x52d   : > { %v1565_v6 = vld [vmem:[%s2983_s12] sm:$0x1]  ;;  %s1608_s7 = sshll.u32 %s1604_s11, 4  ;;  %s2127_s12 = scalar_lea.hbm %s2982_s14, 2  ;;  %s1609_s7 = int_to_ptr.hbm [resolvable:$true] %s1608_s7 }
 0x52e   : > { %s2121_s23 = sshra.s32 %s1609_s7, 4  ;;  %s2122_s23 = int_to_ptr.hbm [resolvable:$true] %s2121_s23 }
 0x52f   : > { %s2123_s28 = scalar_lea.hbm %s2122_s23, 1  ;;  %p2128_p12 = scmp.lt.s32.totalorder %s2122_s23, %s2982_s14 }
 0x530   : > { %p2124_p9 = scmp.ne.s32.totalorder %s2122_s23, %s2123_s28  ;;  %p2129_p13 = scmp.lt.s32.totalorder %s2127_s12, %s2123_s28 }
 0x532   : > { %p2125_p10 = pnand %p2124_p9, %p2384_p5  ;;  %p2130_p0 = por %p2129_p13, %p2128_p12 }
 0x534   : > { %p2126_p11 = pneg %p2125_p10 }
 0x536   : > { %p2131_p1 = pnand %p2130_p0, %p2126_p11 }
 0x5a0   : > { %v1586_v7 = vpop.f32.mrf.mxu1 }
 0x5a1   : > { %v1587_v8 = vadd.f32 %v1586_v7, %v1565_v6 }
 0x5a3   : > { %1590 = vst.msk [vmem:[%s937_s10] sm:$0x1] %vm1589_vm3, %v1587_v8 }
 0x5a4   : > { %2134 = shalt.err (!%p2131_p1)
}
 0x5a5   : > { %1814 = dma.vmem_to_hbm [thread:$0]  (%p2384_p5), %s1607_s1, 16, %s1609_s7, %s1592_s9  }
 0x5a6 PF: > { %s2984_s6 = sld [smem:[#allocation24_spill]] }
 0x5a7   : > { %s2985_s8 = sld [smem:[#allocation22_spill]] }
 0x5ac   : > { %p1856_p2 = scmp.ge.s32.totalorder %s2984_s6, 2 }
 0x5ad   : > { %s1633_s0 = sand.u32 1, %s2985_s8  }
 0x5ae   : > { %p1838_p3 = pnand %p1856_p2, %p2388_p6  ;;  %s1634_s4 = scalar_lea.sflag [#allocation4], %s1633_s0 }
 0x5b0   : > { %p1839_p4 = pneg %p1838_p3 }
 0x5b2   : > { %2168 = dma.done.wait (%p1839_p4), %s1634_s4, 16  }
 0x5b3   : > { %2170 = vsyncadd (%p1839_p4), %s1634_s4, 4294967280  ;;  %s1643_s10 = scalar_lea.sflag [#allocation15], %s1633_s0 }
 0x5b4   : > { %2172 = dma.done.wait (%p1839_p4), %s1643_s10, 16  }
 0x5b5   : > { %2174 = vsyncadd (%p1839_p4), %s1643_s10, 4294967280  ;;  %s2987_s30 = sld [smem:[#allocation25_spill]]  ;;  %s2990_s8 = smov %s2181_s5 }
 0x5b6   : > { %s2988_s23 = sld [smem:[#allocation23_spill]] }
 0x5b7   : > { %s2989_s9 = sld [smem:[#allocation26_spill]] }
 0x5bb   : > { %p46_p5 = scmp.ge.s32.totalorder %s2987_s30, 4  }
 0x5bc   : > { %s2991_s5 = smov %s2988_s23 }
 0x5bd   :  { %48 = sbr.rel (!%p46_p5) target bundleno = 29 (0x1d), region = 205 }
 0x5c2   :  { %1648 = vsyncpa [#allocation3], 1 }
 0x5c3   :  { %1650 = vsyncpa [#allocation3 + $0x1], 1 }
 0x5c4   :  { %1651 = vsyncpa [#allocation6], 1 }
 0x5c5   :  { %1652 = vsyncpa [#allocation9], 1 }
 0x5c6   :  { %1653 = vsyncpa [#allocation12], 1 }
 0x5c7   :  { %1654 = vsyncpa [#allocation4], 1 }
 0x5c8   :  { %1656 = vsyncpa [#allocation4 + $0x1], 1 }
 0x5c9   :  { %1657 = vsyncpa [#allocation15], 1 }
 0x5ca   :  { %1659 = vsyncpa [#allocation15 + $0x1], 1 }

</bundles_post_ra>
